<compile_context>
chip_gen: v6e
topology: v6e:2x2x1
jax: 0.10.0
libtpu: 0.0.40
codegen_flags: <defaults>
</compile_context>

<pallas_src>
import jax
import jax.numpy as jnp
from jax import lax
from jax.experimental import pallas as pl
from jax.experimental.pallas import tpu as pltpu


SUB = 8                    # rows per interleaved sub-tile (one f32 sublane group)
N_INTER = 2                # independent sub-tiles interleaved per recurrence step
TILE_B = SUB * N_INTER     # batch rows handled by one grid step


def lstm_kernel(x_ref, wih_ref, whh_ref, b_ref, wfc_ref, bfc_ref, out_ref):
    """One grid step == one batch tile of TILE_B sequences.

    x_ref   : (T, TILE_B, D) bf16   time-major batch tile
    wih_ref : (D, 4H)        bf16   W_ih^T
    whh_ref : (H, 4H)        bf16   W_hh^T
    b_ref   : (1, 4H)        f32    b_ih + b_hh
    wfc_ref : (1, H)         f32
    bfc_ref : (1, 1)         f32
    out_ref : (1, 1, TILE_B) f32    lane-dense output (batch on lanes)
    Gate order matches PyTorch: i, f, g, o.
    """
    T, tile_b, D = x_ref.shape
    H = whh_ref.shape[0]

    # ---- hoisted input projection: ONE lane-dense bf16 matmul (f32 acc), bias folded in ----
    # K = D is tiny here; this pass is off the recurrence critical path.  For production
    # T*B this should be chunked / kept bf16 to respect v7x's 64 MiB VMEM budget.
    x2d = x_ref[...].reshape(T * tile_b, D)
    xg = jnp.dot(x2d, wih_ref[...],
                 preferred_element_type=jnp.float32) + b_ref[...]      # (T*TILE_B, 4H) f32

    whh = whh_ref[...]                                                  # (H, 4H) bf16, resident

    # N_INTER independent sub-tiles: their per-step MXU passes and EUP gate math have no
    # data dependence on each other, so the LLO scheduler can overlap sub-tile B's vmatmul
    # push with sub-tile A's result drain / sigmoid-tanh, hiding the serialized latency.
    h = [jnp.zeros((SUB, H), jnp.bfloat16) for _ in range(N_INTER)]     # bf16: MXU operand only
    c = [jnp.zeros((SUB, H), jnp.float32) for _ in range(N_INTER)]      # f32: carries precision

    # ---- serial recurrence, fully unrolled (T is small & static) ----
    for t in range(T):
        base = t * tile_b
        for j in range(N_INTER):
            g_x = xg[base + j * SUB: base + (j + 1) * SUB, :]           # sublane-aligned slice
            gates = jnp.dot(h[j], whh,
                            preferred_element_type=jnp.float32) + g_x   # (SUB, 4H) f32
            # one sigmoid + one tanh over the full 4H-lane gates vector, then slice gates
            sig = jax.nn.sigmoid(gates)
            tnh = jnp.tanh(gates)
            i_g = sig[:, 0 * H:1 * H]
            f_g = sig[:, 1 * H:2 * H]
            g_g = tnh[:, 2 * H:3 * H]
            o_g = sig[:, 3 * H:4 * H]
            c[j] = f_g * c[j] + i_g * g_g
            # keep h in bf16 (next step's MXU operand / FC input); drops a per-step cast
            h[j] = (o_g * jnp.tanh(c[j])).astype(jnp.bfloat16)

    # ---- final Linear(H, 1), written lane-dense: out[0, b] = w_fc . h_b + b_fc ----
    h_cat = jnp.concatenate(h, axis=0).astype(jnp.float32)              # (TILE_B, H)
    out_row = lax.dot_general(
        wfc_ref[...], h_cat,
        dimension_numbers=(((1,), (1,)), ((), ())),
        preferred_element_type=jnp.float32) + bfc_ref[...]              # (1, TILE_B)
    out_ref[...] = out_row.reshape(1, 1, tile_b)


@jax.jit
def lstm_forward(x, w_ih, w_hh, b_ih, b_hh, w_fc, b_fc):
    """x: (B, T, D) float32.  PyTorch-shaped weights:
       w_ih (4H, D), w_hh (4H, H), b_ih (4H,), b_hh (4H,), w_fc (1, H), b_fc (1,)."""
    B, T, D = x.shape
    H = w_hh.shape[1]

    n_tiles = pl.cdiv(B, TILE_B)
    B_pad = n_tiles * TILE_B

    # Single-pass pad (padded rows are finite garbage, sliced away below), then a small
    # time-major transpose so per-step gate slices are leading-axis / sublane aligned.
    # For production sizes, feed (B, T, D) directly and index per-t inside the kernel
    # instead of materializing this transposed copy in HBM.
    x_p = jnp.pad(x.astype(jnp.float32), ((0, B_pad - B), (0, 0), (0, 0)))
    x_tm = jnp.transpose(x_p, (1, 0, 2)).astype(jnp.bfloat16)           # (T, B_pad, D)

    wih_T = jnp.asarray(w_ih, jnp.float32).T.astype(jnp.bfloat16)       # (D, 4H)
    whh_T = jnp.asarray(w_hh, jnp.float32).T.astype(jnp.bfloat16)       # (H, 4H)
    bias = (jnp.asarray(b_ih, jnp.float32)
            + jnp.asarray(b_hh, jnp.float32)).reshape(1, 4 * H)         # f32
    wfc = jnp.asarray(w_fc, jnp.float32).reshape(1, H)
    bfc = jnp.asarray(b_fc, jnp.float32).reshape(1, 1)

    out_pad = pl.pallas_call(
        lstm_kernel,
        out_shape=jax.ShapeDtypeStruct((n_tiles, 1, TILE_B), jnp.float32),
        grid=(n_tiles,),
        in_specs=[
            pl.BlockSpec((T, TILE_B, D), lambda i: (0, i, 0)),          # batch tile of x
            pl.BlockSpec((D, 4 * H), lambda i: (0, 0)),
            pl.BlockSpec((H, 4 * H), lambda i: (0, 0)),
            pl.BlockSpec((1, 4 * H), lambda i: (0, 0)),
            pl.BlockSpec((1, H), lambda i: (0, 0)),
            pl.BlockSpec((1, 1), lambda i: (0, 0)),
        ],
        out_specs=pl.BlockSpec((1, 1, TILE_B), lambda i: (i, 0, 0)),    # lane-dense output
        compiler_params=pltpu.CompilerParams(
            dimension_semantics=("parallel",),      # independent batch tiles (2 TCs on v7x)
            vmem_limit_bytes=32 * 1024 * 1024),
    )(x_tm, wih_T, whh_T, bias, wfc, bfc)

    return out_pad.reshape(B_pad)[:B][:, None]


def lstm_reference(x, w_ih, w_hh, b_ih, b_hh, w_fc, b_fc):
    """Pure-JAX f32 reference with identical PyTorch LSTM semantics."""
    B, T, D = x.shape
    H = w_hh.shape[1]
    h = jnp.zeros((B, H), jnp.float32)
    c = jnp.zeros((B, H), jnp.float32)
    for t in range(T):
        gates = x[:, t, :] @ w_ih.T + h @ w_hh.T + b_ih + b_hh
        i_g = jax.nn.sigmoid(gates[:, 0 * H:1 * H])
        f_g = jax.nn.sigmoid(gates[:, 1 * H:2 * H])
        g_g = jnp.tanh(gates[:, 2 * H:3 * H])
        o_g = jax.nn.sigmoid(gates[:, 3 * H:4 * H])
        c = f_g * c + i_g * g_g
        h = o_g * jnp.tanh(c)
    return h @ w_fc.T + b_fc


if __name__ == "__main__":
    B, T, D, H = 2, 8, 8, 32    # batch, seq, input_dim, hidden_dim

    key = jax.random.PRNGKey(0)
    ks = jax.random.split(key, 7)
    scale = 1.0 / jnp.sqrt(H)   # mimics PyTorch's U(-1/sqrt(H), 1/sqrt(H)) init
    x = jax.random.normal(ks[0], (B, T, D), jnp.float32)
    w_ih = jax.random.uniform(ks[1], (4 * H, D), jnp.float32, -scale, scale)
    w_hh = jax.random.uniform(ks[2], (4 * H, H), jnp.float32, -scale, scale)
    b_ih = jax.random.uniform(ks[3], (4 * H,), jnp.float32, -scale, scale)
    b_hh = jax.random.uniform(ks[4], (4 * H,), jnp.float32, -scale, scale)
    w_fc = jax.random.uniform(ks[5], (1, H), jnp.float32, -scale, scale)
    b_fc = jax.random.uniform(ks[6], (1,), jnp.float32, -scale, scale)

    out = jax.block_until_ready(
        lstm_forward(x, w_ih, w_hh, b_ih, b_hh, w_fc, b_fc))
    ref = lstm_reference(x, w_ih, w_hh, b_ih, b_hh, w_fc, b_fc)

    assert out.shape == (B, 1), out.shape
    # bf16 MXU operands / bf16 h (f32 accumulation & f32 c) -> loosened tolerance vs f32 ref.
    assert jnp.allclose(out, ref, rtol=5e-2, atol=2e-2), (out, ref)
    print("KERNEL_OK")
</pallas_src>

<mosaic_0001>
module attributes {stable_mosaic.version = 11 : i64} {
  func.func @lstm_kernel(%arg0: i32, %arg1: memref<8x16x8xbf16, #tpu.memory_space<vmem>>, %arg2: memref<8x128xbf16, #tpu.memory_space<vmem>>, %arg3: memref<32x128xbf16, #tpu.memory_space<vmem>>, %arg4: memref<1x128xf32, #tpu.memory_space<vmem>>, %arg5: memref<1x32xf32, #tpu.memory_space<vmem>>, %arg6: memref<1x1xf32, #tpu.memory_space<vmem>>, %arg7: memref<1x1x16xf32, #tpu.memory_space<vmem>>) attributes {dimension_semantics = [#tpu.dimension_semantics<parallel>], iteration_bounds = array<i64: 1>, scalar_prefetch = 0 : i64, scratch_operands = 0 : i64, tpu.core_type = #tpu.core_type<tc>, window_params = [{transform_indices = @transform_0, window_bounds = array<i64: 8, 16, 8>}, {pipeline_mode = #tpu.pipeline_mode<synchronous>, transform_indices = @transform_1, window_bounds = array<i64: 8, 128>}, {pipeline_mode = #tpu.pipeline_mode<synchronous>, transform_indices = @transform_2, window_bounds = array<i64: 32, 128>}, {pipeline_mode = #tpu.pipeline_mode<synchronous>, transform_indices = @transform_3, window_bounds = array<i64: 1, 128>}, {pipeline_mode = #tpu.pipeline_mode<synchronous>, transform_indices = @transform_4, window_bounds = array<i64: 1, 32>}, {pipeline_mode = #tpu.pipeline_mode<synchronous>, transform_indices = @transform_5, window_bounds = array<i64: 1, 1>}, {transform_indices = @transform_6, window_bounds = array<i64: 1, 1, 16>}]} {
    %c0 = arith.constant 0 : index
    %c0_0 = arith.constant 0 : index
    %c0_1 = arith.constant 0 : index
    %0 = vector.load %arg1[%c0, %c0_0, %c0_1] : memref<8x16x8xbf16, #tpu.memory_space<vmem>>, vector<8x16x8xbf16>
    %1 = vector.shape_cast %0 : vector<8x16x8xbf16> to vector<128x8xbf16>
    %c0_2 = arith.constant 0 : index
    %c0_3 = arith.constant 0 : index
    %2 = vector.load %arg2[%c0_2, %c0_3] : memref<8x128xbf16, #tpu.memory_space<vmem>>, vector<8x128xbf16>
    %cst = arith.constant dense<0.000000e+00> : vector<128x128xf32>
    %3 = tpu.matmul %1, %2, %cst {dimension_numbers = #tpu.dot_dimension_numbers<[1], [0], [0], [1], [0, 0, 1, 1], [], []>} : vector<128x8xbf16>, vector<8x128xbf16>, vector<128x128xf32> -> vector<128x128xf32>
    %c0_4 = arith.constant 0 : index
    %c0_5 = arith.constant 0 : index
    %4 = vector.load %arg4[%c0_4, %c0_5] : memref<1x128xf32, #tpu.memory_space<vmem>>, vector<1x128xf32>
    %5 = vector.broadcast %4 : vector<1x128xf32> to vector<128x128xf32>
    %6 = arith.addf %3, %5 : vector<128x128xf32>
    %c0_6 = arith.constant 0 : index
    %c0_7 = arith.constant 0 : index
    %7 = vector.load %arg3[%c0_6, %c0_7] : memref<32x128xbf16, #tpu.memory_space<vmem>>, vector<32x128xbf16>
    %cst_8 = arith.constant 0.000000e+00 : bf16
    %8 = vector.broadcast %cst_8 : bf16 to vector<8x32xbf16>
    %cst_9 = arith.constant 0.000000e+00 : bf16
    %9 = vector.broadcast %cst_9 : bf16 to vector<8x32xbf16>
    %cst_10 = arith.constant 0.000000e+00 : f32
    %10 = vector.broadcast %cst_10 : f32 to vector<8x32xf32>
    %cst_11 = arith.constant 0.000000e+00 : f32
    %11 = vector.broadcast %cst_11 : f32 to vector<8x32xf32>
    %12 = vector.extract_strided_slice %6 {offsets = [0, 0], sizes = [8, 128], strides = [1, 1]} : vector<128x128xf32> to vector<8x128xf32>
    %cst_12 = arith.constant dense<0.000000e+00> : vector<8x128xf32>
    %13 = tpu.matmul %8, %7, %cst_12 {dimension_numbers = #tpu.dot_dimension_numbers<[1], [0], [0], [1], [0, 0, 1, 1], [], []>} : vector<8x32xbf16>, vector<32x128xbf16>, vector<8x128xf32> -> vector<8x128xf32>
    %14 = arith.addf %13, %12 : vector<8x128xf32>
    %15 = arith.negf %14 : vector<8x128xf32>
    %16 = math.exp %15 : vector<8x128xf32>
    %cst_13 = arith.constant 1.000000e+00 : f32
    %17 = vector.broadcast %cst_13 : f32 to vector<8x128xf32>
    %18 = arith.addf %17, %16 : vector<8x128xf32>
    %19 = arith.divf %17, %18 : vector<8x128xf32>
    %20 = math.tanh %14 : vector<8x128xf32>
    %21 = vector.extract_strided_slice %19 {offsets = [0, 0], sizes = [8, 32], strides = [1, 1]} : vector<8x128xf32> to vector<8x32xf32>
    %22 = vector.extract_strided_slice %19 {offsets = [0, 32], sizes = [8, 32], strides = [1, 1]} : vector<8x128xf32> to vector<8x32xf32>
    %23 = vector.extract_strided_slice %20 {offsets = [0, 64], sizes = [8, 32], strides = [1, 1]} : vector<8x128xf32> to vector<8x32xf32>
    %24 = vector.extract_strided_slice %19 {offsets = [0, 96], sizes = [8, 32], strides = [1, 1]} : vector<8x128xf32> to vector<8x32xf32>
    %25 = arith.mulf %22, %10 : vector<8x32xf32>
    %26 = arith.mulf %21, %23 : vector<8x32xf32>
    %27 = arith.addf %25, %26 : vector<8x32xf32>
    %28 = math.tanh %27 : vector<8x32xf32>
    %29 = arith.mulf %24, %28 : vector<8x32xf32>
    %30 = arith.truncf %29 : vector<8x32xf32> to vector<8x32xbf16>
    %31 = vector.extract_strided_slice %6 {offsets = [8, 0], sizes = [8, 128], strides = [1, 1]} : vector<128x128xf32> to vector<8x128xf32>
    %cst_14 = arith.constant dense<0.000000e+00> : vector<8x128xf32>
    %32 = tpu.matmul %9, %7, %cst_14 {dimension_numbers = #tpu.dot_dimension_numbers<[1], [0], [0], [1], [0, 0, 1, 1], [], []>} : vector<8x32xbf16>, vector<32x128xbf16>, vector<8x128xf32> -> vector<8x128xf32>
    %33 = arith.addf %32, %31 : vector<8x128xf32>
    %34 = arith.negf %33 : vector<8x128xf32>
    %35 = math.exp %34 : vector<8x128xf32>
    %cst_15 = arith.constant 1.000000e+00 : f32
    %36 = vector.broadcast %cst_15 : f32 to vector<8x128xf32>
    %37 = arith.addf %36, %35 : vector<8x128xf32>
    %38 = arith.divf %36, %37 : vector<8x128xf32>
    %39 = math.tanh %33 : vector<8x128xf32>
    %40 = vector.extract_strided_slice %38 {offsets = [0, 0], sizes = [8, 32], strides = [1, 1]} : vector<8x128xf32> to vector<8x32xf32>
    %41 = vector.extract_strided_slice %38 {offsets = [0, 32], sizes = [8, 32], strides = [1, 1]} : vector<8x128xf32> to vector<8x32xf32>
    %42 = vector.extract_strided_slice %39 {offsets = [0, 64], sizes = [8, 32], strides = [1, 1]} : vector<8x128xf32> to vector<8x32xf32>
    %43 = vector.extract_strided_slice %38 {offsets = [0, 96], sizes = [8, 32], strides = [1, 1]} : vector<8x128xf32> to vector<8x32xf32>
    %44 = arith.mulf %41, %11 : vector<8x32xf32>
    %45 = arith.mulf %40, %42 : vector<8x32xf32>
    %46 = arith.addf %44, %45 : vector<8x32xf32>
    %47 = math.tanh %46 : vector<8x32xf32>
    %48 = arith.mulf %43, %47 : vector<8x32xf32>
    %49 = arith.truncf %48 : vector<8x32xf32> to vector<8x32xbf16>
    %50 = vector.extract_strided_slice %6 {offsets = [16, 0], sizes = [8, 128], strides = [1, 1]} : vector<128x128xf32> to vector<8x128xf32>
    %cst_16 = arith.constant dense<0.000000e+00> : vector<8x128xf32>
    %51 = tpu.matmul %30, %7, %cst_16 {dimension_numbers = #tpu.dot_dimension_numbers<[1], [0], [0], [1], [0, 0, 1, 1], [], []>} : vector<8x32xbf16>, vector<32x128xbf16>, vector<8x128xf32> -> vector<8x128xf32>
    %52 = arith.addf %51, %50 : vector<8x128xf32>
    %53 = arith.negf %52 : vector<8x128xf32>
    %54 = math.exp %53 : vector<8x128xf32>
    %cst_17 = arith.constant 1.000000e+00 : f32
    %55 = vector.broadcast %cst_17 : f32 to vector<8x128xf32>
    %56 = arith.addf %55, %54 : vector<8x128xf32>
    %57 = arith.divf %55, %56 : vector<8x128xf32>
    %58 = math.tanh %52 : vector<8x128xf32>
    %59 = vector.extract_strided_slice %57 {offsets = [0, 0], sizes = [8, 32], strides = [1, 1]} : vector<8x128xf32> to vector<8x32xf32>
    %60 = vector.extract_strided_slice %57 {offsets = [0, 32], sizes = [8, 32], strides = [1, 1]} : vector<8x128xf32> to vector<8x32xf32>
    %61 = vector.extract_strided_slice %58 {offsets = [0, 64], sizes = [8, 32], strides = [1, 1]} : vector<8x128xf32> to vector<8x32xf32>
    %62 = vector.extract_strided_slice %57 {offsets = [0, 96], sizes = [8, 32], strides = [1, 1]} : vector<8x128xf32> to vector<8x32xf32>
    %63 = arith.mulf %60, %27 : vector<8x32xf32>
    %64 = arith.mulf %59, %61 : vector<8x32xf32>
    %65 = arith.addf %63, %64 : vector<8x32xf32>
    %66 = math.tanh %65 : vector<8x32xf32>
    %67 = arith.mulf %62, %66 : vector<8x32xf32>
    %68 = arith.truncf %67 : vector<8x32xf32> to vector<8x32xbf16>
    %69 = vector.extract_strided_slice %6 {offsets = [24, 0], sizes = [8, 128], strides = [1, 1]} : vector<128x128xf32> to vector<8x128xf32>
    %cst_18 = arith.constant dense<0.000000e+00> : vector<8x128xf32>
    %70 = tpu.matmul %49, %7, %cst_18 {dimension_numbers = #tpu.dot_dimension_numbers<[1], [0], [0], [1], [0, 0, 1, 1], [], []>} : vector<8x32xbf16>, vector<32x128xbf16>, vector<8x128xf32> -> vector<8x128xf32>
    %71 = arith.addf %70, %69 : vector<8x128xf32>
    %72 = arith.negf %71 : vector<8x128xf32>
    %73 = math.exp %72 : vector<8x128xf32>
    %cst_19 = arith.constant 1.000000e+00 : f32
    %74 = vector.broadcast %cst_19 : f32 to vector<8x128xf32>
    %75 = arith.addf %74, %73 : vector<8x128xf32>
    %76 = arith.divf %74, %75 : vector<8x128xf32>
    %77 = math.tanh %71 : vector<8x128xf32>
    %78 = vector.extract_strided_slice %76 {offsets = [0, 0], sizes = [8, 32], strides = [1, 1]} : vector<8x128xf32> to vector<8x32xf32>
    %79 = vector.extract_strided_slice %76 {offsets = [0, 32], sizes = [8, 32], strides = [1, 1]} : vector<8x128xf32> to vector<8x32xf32>
    %80 = vector.extract_strided_slice %77 {offsets = [0, 64], sizes = [8, 32], strides = [1, 1]} : vector<8x128xf32> to vector<8x32xf32>
    %81 = vector.extract_strided_slice %76 {offsets = [0, 96], sizes = [8, 32], strides = [1, 1]} : vector<8x128xf32> to vector<8x32xf32>
    %82 = arith.mulf %79, %46 : vector<8x32xf32>
    %83 = arith.mulf %78, %80 : vector<8x32xf32>
    %84 = arith.addf %82, %83 : vector<8x32xf32>
    %85 = math.tanh %84 : vector<8x32xf32>
    %86 = arith.mulf %81, %85 : vector<8x32xf32>
    %87 = arith.truncf %86 : vector<8x32xf32> to vector<8x32xbf16>
    %88 = vector.extract_strided_slice %6 {offsets = [32, 0], sizes = [8, 128], strides = [1, 1]} : vector<128x128xf32> to vector<8x128xf32>
    %cst_20 = arith.constant dense<0.000000e+00> : vector<8x128xf32>
    %89 = tpu.matmul %68, %7, %cst_20 {dimension_numbers = #tpu.dot_dimension_numbers<[1], [0], [0], [1], [0, 0, 1, 1], [], []>} : vector<8x32xbf16>, vector<32x128xbf16>, vector<8x128xf32> -> vector<8x128xf32>
    %90 = arith.addf %89, %88 : vector<8x128xf32>
    %91 = arith.negf %90 : vector<8x128xf32>
    %92 = math.exp %91 : vector<8x128xf32>
    %cst_21 = arith.constant 1.000000e+00 : f32
    %93 = vector.broadcast %cst_21 : f32 to vector<8x128xf32>
    %94 = arith.addf %93, %92 : vector<8x128xf32>
    %95 = arith.divf %93, %94 : vector<8x128xf32>
    %96 = math.tanh %90 : vector<8x128xf32>
    %97 = vector.extract_strided_slice %95 {offsets = [0, 0], sizes = [8, 32], strides = [1, 1]} : vector<8x128xf32> to vector<8x32xf32>
    %98 = vector.extract_strided_slice %95 {offsets = [0, 32], sizes = [8, 32], strides = [1, 1]} : vector<8x128xf32> to vector<8x32xf32>
    %99 = vector.extract_strided_slice %96 {offsets = [0, 64], sizes = [8, 32], strides = [1, 1]} : vector<8x128xf32> to vector<8x32xf32>
    %100 = vector.extract_strided_slice %95 {offsets = [0, 96], sizes = [8, 32], strides = [1, 1]} : vector<8x128xf32> to vector<8x32xf32>
    %101 = arith.mulf %98, %65 : vector<8x32xf32>
    %102 = arith.mulf %97, %99 : vector<8x32xf32>
    %103 = arith.addf %101, %102 : vector<8x32xf32>
    %104 = math.tanh %103 : vector<8x32xf32>
    %105 = arith.mulf %100, %104 : vector<8x32xf32>
    %106 = arith.truncf %105 : vector<8x32xf32> to vector<8x32xbf16>
    %107 = vector.extract_strided_slice %6 {offsets = [40, 0], sizes = [8, 128], strides = [1, 1]} : vector<128x128xf32> to vector<8x128xf32>
    %cst_22 = arith.constant dense<0.000000e+00> : vector<8x128xf32>
    %108 = tpu.matmul %87, %7, %cst_22 {dimension_numbers = #tpu.dot_dimension_numbers<[1], [0], [0], [1], [0, 0, 1, 1], [], []>} : vector<8x32xbf16>, vector<32x128xbf16>, vector<8x128xf32> -> vector<8x128xf32>
    %109 = arith.addf %108, %107 : vector<8x128xf32>
    %110 = arith.negf %109 : vector<8x128xf32>
    %111 = math.exp %110 : vector<8x128xf32>
    %cst_23 = arith.constant 1.000000e+00 : f32
    %112 = vector.broadcast %cst_23 : f32 to vector<8x128xf32>
    %113 = arith.addf %112, %111 : vector<8x128xf32>
    %114 = arith.divf %112, %113 : vector<8x128xf32>
    %115 = math.tanh %109 : vector<8x128xf32>
    %116 = vector.extract_strided_slice %114 {offsets = [0, 0], sizes = [8, 32], strides = [1, 1]} : vector<8x128xf32> to vector<8x32xf32>
    %117 = vector.extract_strided_slice %114 {offsets = [0, 32], sizes = [8, 32], strides = [1, 1]} : vector<8x128xf32> to vector<8x32xf32>
    %118 = vector.extract_strided_slice %115 {offsets = [0, 64], sizes = [8, 32], strides = [1, 1]} : vector<8x128xf32> to vector<8x32xf32>
    %119 = vector.extract_strided_slice %114 {offsets = [0, 96], sizes = [8, 32], strides = [1, 1]} : vector<8x128xf32> to vector<8x32xf32>
    %120 = arith.mulf %117, %84 : vector<8x32xf32>
    %121 = arith.mulf %116, %118 : vector<8x32xf32>
    %122 = arith.addf %120, %121 : vector<8x32xf32>
    %123 = math.tanh %122 : vector<8x32xf32>
    %124 = arith.mulf %119, %123 : vector<8x32xf32>
    %125 = arith.truncf %124 : vector<8x32xf32> to vector<8x32xbf16>
    %126 = vector.extract_strided_slice %6 {offsets = [48, 0], sizes = [8, 128], strides = [1, 1]} : vector<128x128xf32> to vector<8x128xf32>
    %cst_24 = arith.constant dense<0.000000e+00> : vector<8x128xf32>
    %127 = tpu.matmul %106, %7, %cst_24 {dimension_numbers = #tpu.dot_dimension_numbers<[1], [0], [0], [1], [0, 0, 1, 1], [], []>} : vector<8x32xbf16>, vector<32x128xbf16>, vector<8x128xf32> -> vector<8x128xf32>
    %128 = arith.addf %127, %126 : vector<8x128xf32>
    %129 = arith.negf %128 : vector<8x128xf32>
    %130 = math.exp %129 : vector<8x128xf32>
    %cst_25 = arith.constant 1.000000e+00 : f32
    %131 = vector.broadcast %cst_25 : f32 to vector<8x128xf32>
    %132 = arith.addf %131, %130 : vector<8x128xf32>
    %133 = arith.divf %131, %132 : vector<8x128xf32>
    %134 = math.tanh %128 : vector<8x128xf32>
    %135 = vector.extract_strided_slice %133 {offsets = [0, 0], sizes = [8, 32], strides = [1, 1]} : vector<8x128xf32> to vector<8x32xf32>
    %136 = vector.extract_strided_slice %133 {offsets = [0, 32], sizes = [8, 32], strides = [1, 1]} : vector<8x128xf32> to vector<8x32xf32>
    %137 = vector.extract_strided_slice %134 {offsets = [0, 64], sizes = [8, 32], strides = [1, 1]} : vector<8x128xf32> to vector<8x32xf32>
    %138 = vector.extract_strided_slice %133 {offsets = [0, 96], sizes = [8, 32], strides = [1, 1]} : vector<8x128xf32> to vector<8x32xf32>
    %139 = arith.mulf %136, %103 : vector<8x32xf32>
    %140 = arith.mulf %135, %137 : vector<8x32xf32>
    %141 = arith.addf %139, %140 : vector<8x32xf32>
    %142 = math.tanh %141 : vector<8x32xf32>
    %143 = arith.mulf %138, %142 : vector<8x32xf32>
    %144 = arith.truncf %143 : vector<8x32xf32> to vector<8x32xbf16>
    %145 = vector.extract_strided_slice %6 {offsets = [56, 0], sizes = [8, 128], strides = [1, 1]} : vector<128x128xf32> to vector<8x128xf32>
    %cst_26 = arith.constant dense<0.000000e+00> : vector<8x128xf32>
    %146 = tpu.matmul %125, %7, %cst_26 {dimension_numbers = #tpu.dot_dimension_numbers<[1], [0], [0], [1], [0, 0, 1, 1], [], []>} : vector<8x32xbf16>, vector<32x128xbf16>, vector<8x128xf32> -> vector<8x128xf32>
    %147 = arith.addf %146, %145 : vector<8x128xf32>
    %148 = arith.negf %147 : vector<8x128xf32>
    %149 = math.exp %148 : vector<8x128xf32>
    %cst_27 = arith.constant 1.000000e+00 : f32
    %150 = vector.broadcast %cst_27 : f32 to vector<8x128xf32>
    %151 = arith.addf %150, %149 : vector<8x128xf32>
    %152 = arith.divf %150, %151 : vector<8x128xf32>
    %153 = math.tanh %147 : vector<8x128xf32>
    %154 = vector.extract_strided_slice %152 {offsets = [0, 0], sizes = [8, 32], strides = [1, 1]} : vector<8x128xf32> to vector<8x32xf32>
    %155 = vector.extract_strided_slice %152 {offsets = [0, 32], sizes = [8, 32], strides = [1, 1]} : vector<8x128xf32> to vector<8x32xf32>
    %156 = vector.extract_strided_slice %153 {offsets = [0, 64], sizes = [8, 32], strides = [1, 1]} : vector<8x128xf32> to vector<8x32xf32>
    %157 = vector.extract_strided_slice %152 {offsets = [0, 96], sizes = [8, 32], strides = [1, 1]} : vector<8x128xf32> to vector<8x32xf32>
    %158 = arith.mulf %155, %122 : vector<8x32xf32>
    %159 = arith.mulf %154, %156 : vector<8x32xf32>
    %160 = arith.addf %158, %159 : vector<8x32xf32>
    %161 = math.tanh %160 : vector<8x32xf32>
    %162 = arith.mulf %157, %161 : vector<8x32xf32>
    %163 = arith.truncf %162 : vector<8x32xf32> to vector<8x32xbf16>
    %164 = vector.extract_strided_slice %6 {offsets = [64, 0], sizes = [8, 128], strides = [1, 1]} : vector<128x128xf32> to vector<8x128xf32>
    %cst_28 = arith.constant dense<0.000000e+00> : vector<8x128xf32>
    %165 = tpu.matmul %144, %7, %cst_28 {dimension_numbers = #tpu.dot_dimension_numbers<[1], [0], [0], [1], [0, 0, 1, 1], [], []>} : vector<8x32xbf16>, vector<32x128xbf16>, vector<8x128xf32> -> vector<8x128xf32>
    %166 = arith.addf %165, %164 : vector<8x128xf32>
    %167 = arith.negf %166 : vector<8x128xf32>
    %168 = math.exp %167 : vector<8x128xf32>
    %cst_29 = arith.constant 1.000000e+00 : f32
    %169 = vector.broadcast %cst_29 : f32 to vector<8x128xf32>
    %170 = arith.addf %169, %168 : vector<8x128xf32>
    %171 = arith.divf %169, %170 : vector<8x128xf32>
    %172 = math.tanh %166 : vector<8x128xf32>
    %173 = vector.extract_strided_slice %171 {offsets = [0, 0], sizes = [8, 32], strides = [1, 1]} : vector<8x128xf32> to vector<8x32xf32>
    %174 = vector.extract_strided_slice %171 {offsets = [0, 32], sizes = [8, 32], strides = [1, 1]} : vector<8x128xf32> to vector<8x32xf32>
    %175 = vector.extract_strided_slice %172 {offsets = [0, 64], sizes = [8, 32], strides = [1, 1]} : vector<8x128xf32> to vector<8x32xf32>
    %176 = vector.extract_strided_slice %171 {offsets = [0, 96], sizes = [8, 32], strides = [1, 1]} : vector<8x128xf32> to vector<8x32xf32>
    %177 = arith.mulf %174, %141 : vector<8x32xf32>
    %178 = arith.mulf %173, %175 : vector<8x32xf32>
    %179 = arith.addf %177, %178 : vector<8x32xf32>
    %180 = math.tanh %179 : vector<8x32xf32>
    %181 = arith.mulf %176, %180 : vector<8x32xf32>
    %182 = arith.truncf %181 : vector<8x32xf32> to vector<8x32xbf16>
    %183 = vector.extract_strided_slice %6 {offsets = [72, 0], sizes = [8, 128], strides = [1, 1]} : vector<128x128xf32> to vector<8x128xf32>
    %cst_30 = arith.constant dense<0.000000e+00> : vector<8x128xf32>
    %184 = tpu.matmul %163, %7, %cst_30 {dimension_numbers = #tpu.dot_dimension_numbers<[1], [0], [0], [1], [0, 0, 1, 1], [], []>} : vector<8x32xbf16>, vector<32x128xbf16>, vector<8x128xf32> -> vector<8x128xf32>
    %185 = arith.addf %184, %183 : vector<8x128xf32>
    %186 = arith.negf %185 : vector<8x128xf32>
    %187 = math.exp %186 : vector<8x128xf32>
    %cst_31 = arith.constant 1.000000e+00 : f32
    %188 = vector.broadcast %cst_31 : f32 to vector<8x128xf32>
    %189 = arith.addf %188, %187 : vector<8x128xf32>
    %190 = arith.divf %188, %189 : vector<8x128xf32>
    %191 = math.tanh %185 : vector<8x128xf32>
    %192 = vector.extract_strided_slice %190 {offsets = [0, 0], sizes = [8, 32], strides = [1, 1]} : vector<8x128xf32> to vector<8x32xf32>
    %193 = vector.extract_strided_slice %190 {offsets = [0, 32], sizes = [8, 32], strides = [1, 1]} : vector<8x128xf32> to vector<8x32xf32>
    %194 = vector.extract_strided_slice %191 {offsets = [0, 64], sizes = [8, 32], strides = [1, 1]} : vector<8x128xf32> to vector<8x32xf32>
    %195 = vector.extract_strided_slice %190 {offsets = [0, 96], sizes = [8, 32], strides = [1, 1]} : vector<8x128xf32> to vector<8x32xf32>
    %196 = arith.mulf %193, %160 : vector<8x32xf32>
    %197 = arith.mulf %192, %194 : vector<8x32xf32>
    %198 = arith.addf %196, %197 : vector<8x32xf32>
    %199 = math.tanh %198 : vector<8x32xf32>
    %200 = arith.mulf %195, %199 : vector<8x32xf32>
    %201 = arith.truncf %200 : vector<8x32xf32> to vector<8x32xbf16>
    %202 = vector.extract_strided_slice %6 {offsets = [80, 0], sizes = [8, 128], strides = [1, 1]} : vector<128x128xf32> to vector<8x128xf32>
    %cst_32 = arith.constant dense<0.000000e+00> : vector<8x128xf32>
    %203 = tpu.matmul %182, %7, %cst_32 {dimension_numbers = #tpu.dot_dimension_numbers<[1], [0], [0], [1], [0, 0, 1, 1], [], []>} : vector<8x32xbf16>, vector<32x128xbf16>, vector<8x128xf32> -> vector<8x128xf32>
    %204 = arith.addf %203, %202 : vector<8x128xf32>
    %205 = arith.negf %204 : vector<8x128xf32>
    %206 = math.exp %205 : vector<8x128xf32>
    %cst_33 = arith.constant 1.000000e+00 : f32
    %207 = vector.broadcast %cst_33 : f32 to vector<8x128xf32>
    %208 = arith.addf %207, %206 : vector<8x128xf32>
    %209 = arith.divf %207, %208 : vector<8x128xf32>
    %210 = math.tanh %204 : vector<8x128xf32>
    %211 = vector.extract_strided_slice %209 {offsets = [0, 0], sizes = [8, 32], strides = [1, 1]} : vector<8x128xf32> to vector<8x32xf32>
    %212 = vector.extract_strided_slice %209 {offsets = [0, 32], sizes = [8, 32], strides = [1, 1]} : vector<8x128xf32> to vector<8x32xf32>
    %213 = vector.extract_strided_slice %210 {offsets = [0, 64], sizes = [8, 32], strides = [1, 1]} : vector<8x128xf32> to vector<8x32xf32>
    %214 = vector.extract_strided_slice %209 {offsets = [0, 96], sizes = [8, 32], strides = [1, 1]} : vector<8x128xf32> to vector<8x32xf32>
    %215 = arith.mulf %212, %179 : vector<8x32xf32>
    %216 = arith.mulf %211, %213 : vector<8x32xf32>
    %217 = arith.addf %215, %216 : vector<8x32xf32>
    %218 = math.tanh %217 : vector<8x32xf32>
    %219 = arith.mulf %214, %218 : vector<8x32xf32>
    %220 = arith.truncf %219 : vector<8x32xf32> to vector<8x32xbf16>
    %221 = vector.extract_strided_slice %6 {offsets = [88, 0], sizes = [8, 128], strides = [1, 1]} : vector<128x128xf32> to vector<8x128xf32>
    %cst_34 = arith.constant dense<0.000000e+00> : vector<8x128xf32>
    %222 = tpu.matmul %201, %7, %cst_34 {dimension_numbers = #tpu.dot_dimension_numbers<[1], [0], [0], [1], [0, 0, 1, 1], [], []>} : vector<8x32xbf16>, vector<32x128xbf16>, vector<8x128xf32> -> vector<8x128xf32>
    %223 = arith.addf %222, %221 : vector<8x128xf32>
    %224 = arith.negf %223 : vector<8x128xf32>
    %225 = math.exp %224 : vector<8x128xf32>
    %cst_35 = arith.constant 1.000000e+00 : f32
    %226 = vector.broadcast %cst_35 : f32 to vector<8x128xf32>
    %227 = arith.addf %226, %225 : vector<8x128xf32>
    %228 = arith.divf %226, %227 : vector<8x128xf32>
    %229 = math.tanh %223 : vector<8x128xf32>
    %230 = vector.extract_strided_slice %228 {offsets = [0, 0], sizes = [8, 32], strides = [1, 1]} : vector<8x128xf32> to vector<8x32xf32>
    %231 = vector.extract_strided_slice %228 {offsets = [0, 32], sizes = [8, 32], strides = [1, 1]} : vector<8x128xf32> to vector<8x32xf32>
    %232 = vector.extract_strided_slice %229 {offsets = [0, 64], sizes = [8, 32], strides = [1, 1]} : vector<8x128xf32> to vector<8x32xf32>
    %233 = vector.extract_strided_slice %228 {offsets = [0, 96], sizes = [8, 32], strides = [1, 1]} : vector<8x128xf32> to vector<8x32xf32>
    %234 = arith.mulf %231, %198 : vector<8x32xf32>
    %235 = arith.mulf %230, %232 : vector<8x32xf32>
    %236 = arith.addf %234, %235 : vector<8x32xf32>
    %237 = math.tanh %236 : vector<8x32xf32>
    %238 = arith.mulf %233, %237 : vector<8x32xf32>
    %239 = arith.truncf %238 : vector<8x32xf32> to vector<8x32xbf16>
    %240 = vector.extract_strided_slice %6 {offsets = [96, 0], sizes = [8, 128], strides = [1, 1]} : vector<128x128xf32> to vector<8x128xf32>
    %cst_36 = arith.constant dense<0.000000e+00> : vector<8x128xf32>
    %241 = tpu.matmul %220, %7, %cst_36 {dimension_numbers = #tpu.dot_dimension_numbers<[1], [0], [0], [1], [0, 0, 1, 1], [], []>} : vector<8x32xbf16>, vector<32x128xbf16>, vector<8x128xf32> -> vector<8x128xf32>
    %242 = arith.addf %241, %240 : vector<8x128xf32>
    %243 = arith.negf %242 : vector<8x128xf32>
    %244 = math.exp %243 : vector<8x128xf32>
    %cst_37 = arith.constant 1.000000e+00 : f32
    %245 = vector.broadcast %cst_37 : f32 to vector<8x128xf32>
    %246 = arith.addf %245, %244 : vector<8x128xf32>
    %247 = arith.divf %245, %246 : vector<8x128xf32>
    %248 = math.tanh %242 : vector<8x128xf32>
    %249 = vector.extract_strided_slice %247 {offsets = [0, 0], sizes = [8, 32], strides = [1, 1]} : vector<8x128xf32> to vector<8x32xf32>
    %250 = vector.extract_strided_slice %247 {offsets = [0, 32], sizes = [8, 32], strides = [1, 1]} : vector<8x128xf32> to vector<8x32xf32>
    %251 = vector.extract_strided_slice %248 {offsets = [0, 64], sizes = [8, 32], strides = [1, 1]} : vector<8x128xf32> to vector<8x32xf32>
    %252 = vector.extract_strided_slice %247 {offsets = [0, 96], sizes = [8, 32], strides = [1, 1]} : vector<8x128xf32> to vector<8x32xf32>
    %253 = arith.mulf %250, %217 : vector<8x32xf32>
    %254 = arith.mulf %249, %251 : vector<8x32xf32>
    %255 = arith.addf %253, %254 : vector<8x32xf32>
    %256 = math.tanh %255 : vector<8x32xf32>
    %257 = arith.mulf %252, %256 : vector<8x32xf32>
    %258 = arith.truncf %257 : vector<8x32xf32> to vector<8x32xbf16>
    %259 = vector.extract_strided_slice %6 {offsets = [104, 0], sizes = [8, 128], strides = [1, 1]} : vector<128x128xf32> to vector<8x128xf32>
    %cst_38 = arith.constant dense<0.000000e+00> : vector<8x128xf32>
    %260 = tpu.matmul %239, %7, %cst_38 {dimension_numbers = #tpu.dot_dimension_numbers<[1], [0], [0], [1], [0, 0, 1, 1], [], []>} : vector<8x32xbf16>, vector<32x128xbf16>, vector<8x128xf32> -> vector<8x128xf32>
    %261 = arith.addf %260, %259 : vector<8x128xf32>
    %262 = arith.negf %261 : vector<8x128xf32>
    %263 = math.exp %262 : vector<8x128xf32>
    %cst_39 = arith.constant 1.000000e+00 : f32
    %264 = vector.broadcast %cst_39 : f32 to vector<8x128xf32>
    %265 = arith.addf %264, %263 : vector<8x128xf32>
    %266 = arith.divf %264, %265 : vector<8x128xf32>
    %267 = math.tanh %261 : vector<8x128xf32>
    %268 = vector.extract_strided_slice %266 {offsets = [0, 0], sizes = [8, 32], strides = [1, 1]} : vector<8x128xf32> to vector<8x32xf32>
    %269 = vector.extract_strided_slice %266 {offsets = [0, 32], sizes = [8, 32], strides = [1, 1]} : vector<8x128xf32> to vector<8x32xf32>
    %270 = vector.extract_strided_slice %267 {offsets = [0, 64], sizes = [8, 32], strides = [1, 1]} : vector<8x128xf32> to vector<8x32xf32>
    %271 = vector.extract_strided_slice %266 {offsets = [0, 96], sizes = [8, 32], strides = [1, 1]} : vector<8x128xf32> to vector<8x32xf32>
    %272 = arith.mulf %269, %236 : vector<8x32xf32>
    %273 = arith.mulf %268, %270 : vector<8x32xf32>
    %274 = arith.addf %272, %273 : vector<8x32xf32>
    %275 = math.tanh %274 : vector<8x32xf32>
    %276 = arith.mulf %271, %275 : vector<8x32xf32>
    %277 = arith.truncf %276 : vector<8x32xf32> to vector<8x32xbf16>
    %278 = vector.extract_strided_slice %6 {offsets = [112, 0], sizes = [8, 128], strides = [1, 1]} : vector<128x128xf32> to vector<8x128xf32>
    %cst_40 = arith.constant dense<0.000000e+00> : vector<8x128xf32>
    %279 = tpu.matmul %258, %7, %cst_40 {dimension_numbers = #tpu.dot_dimension_numbers<[1], [0], [0], [1], [0, 0, 1, 1], [], []>} : vector<8x32xbf16>, vector<32x128xbf16>, vector<8x128xf32> -> vector<8x128xf32>
    %280 = arith.addf %279, %278 : vector<8x128xf32>
    %281 = arith.negf %280 : vector<8x128xf32>
    %282 = math.exp %281 : vector<8x128xf32>
    %cst_41 = arith.constant 1.000000e+00 : f32
    %283 = vector.broadcast %cst_41 : f32 to vector<8x128xf32>
    %284 = arith.addf %283, %282 : vector<8x128xf32>
    %285 = arith.divf %283, %284 : vector<8x128xf32>
    %286 = math.tanh %280 : vector<8x128xf32>
    %287 = vector.extract_strided_slice %285 {offsets = [0, 0], sizes = [8, 32], strides = [1, 1]} : vector<8x128xf32> to vector<8x32xf32>
    %288 = vector.extract_strided_slice %285 {offsets = [0, 32], sizes = [8, 32], strides = [1, 1]} : vector<8x128xf32> to vector<8x32xf32>
    %289 = vector.extract_strided_slice %286 {offsets = [0, 64], sizes = [8, 32], strides = [1, 1]} : vector<8x128xf32> to vector<8x32xf32>
    %290 = vector.extract_strided_slice %285 {offsets = [0, 96], sizes = [8, 32], strides = [1, 1]} : vector<8x128xf32> to vector<8x32xf32>
    %291 = arith.mulf %288, %255 : vector<8x32xf32>
    %292 = arith.mulf %287, %289 : vector<8x32xf32>
    %293 = arith.addf %291, %292 : vector<8x32xf32>
    %294 = math.tanh %293 : vector<8x32xf32>
    %295 = arith.mulf %290, %294 : vector<8x32xf32>
    %296 = arith.truncf %295 : vector<8x32xf32> to vector<8x32xbf16>
    %297 = vector.extract_strided_slice %6 {offsets = [120, 0], sizes = [8, 128], strides = [1, 1]} : vector<128x128xf32> to vector<8x128xf32>
    %cst_42 = arith.constant dense<0.000000e+00> : vector<8x128xf32>
    %298 = tpu.matmul %277, %7, %cst_42 {dimension_numbers = #tpu.dot_dimension_numbers<[1], [0], [0], [1], [0, 0, 1, 1], [], []>} : vector<8x32xbf16>, vector<32x128xbf16>, vector<8x128xf32> -> vector<8x128xf32>
    %299 = arith.addf %298, %297 : vector<8x128xf32>
    %300 = arith.negf %299 : vector<8x128xf32>
    %301 = math.exp %300 : vector<8x128xf32>
    %cst_43 = arith.constant 1.000000e+00 : f32
    %302 = vector.broadcast %cst_43 : f32 to vector<8x128xf32>
    %303 = arith.addf %302, %301 : vector<8x128xf32>
    %304 = arith.divf %302, %303 : vector<8x128xf32>
    %305 = math.tanh %299 : vector<8x128xf32>
    %306 = vector.extract_strided_slice %304 {offsets = [0, 0], sizes = [8, 32], strides = [1, 1]} : vector<8x128xf32> to vector<8x32xf32>
    %307 = vector.extract_strided_slice %304 {offsets = [0, 32], sizes = [8, 32], strides = [1, 1]} : vector<8x128xf32> to vector<8x32xf32>
    %308 = vector.extract_strided_slice %305 {offsets = [0, 64], sizes = [8, 32], strides = [1, 1]} : vector<8x128xf32> to vector<8x32xf32>
    %309 = vector.extract_strided_slice %304 {offsets = [0, 96], sizes = [8, 32], strides = [1, 1]} : vector<8x128xf32> to vector<8x32xf32>
    %310 = arith.mulf %307, %274 : vector<8x32xf32>
    %311 = arith.mulf %306, %308 : vector<8x32xf32>
    %312 = arith.addf %310, %311 : vector<8x32xf32>
    %313 = math.tanh %312 : vector<8x32xf32>
    %314 = arith.mulf %309, %313 : vector<8x32xf32>
    %315 = arith.truncf %314 : vector<8x32xf32> to vector<8x32xbf16>
    %316 = tpu.concatenate %296, %315 in 0 : vector<8x32xbf16>, vector<8x32xbf16> -> vector<16x32xbf16>
    %317 = arith.extf %316 : vector<16x32xbf16> to vector<16x32xf32>
    %c0_44 = arith.constant 0 : index
    %c0_45 = arith.constant 0 : index
    %318 = vector.load %arg5[%c0_44, %c0_45] : memref<1x32xf32, #tpu.memory_space<vmem>>, vector<1x32xf32>
    %cst_46 = arith.constant dense<0.000000e+00> : vector<1x16xf32>
    %319 = tpu.matmul %318, %317, %cst_46 {dimension_numbers = #tpu.dot_dimension_numbers<[1], [1], [0], [0], [0, 0, 1, 0], [], []>} : vector<1x32xf32>, vector<16x32xf32>, vector<1x16xf32> -> vector<1x16xf32>
    %c0_47 = arith.constant 0 : index
    %c0_48 = arith.constant 0 : index
    %320 = vector.load %arg6[%c0_47, %c0_48] : memref<1x1xf32, #tpu.memory_space<vmem>>, vector<1x1xf32>
    %321 = vector.broadcast %320 : vector<1x1xf32> to vector<1x16xf32>
    %322 = arith.addf %319, %321 : vector<1x16xf32>
    %323 = vector.shape_cast %322 : vector<1x16xf32> to vector<1x1x16xf32>
    %c0_49 = arith.constant 0 : index
    %c0_50 = arith.constant 0 : index
    %c0_51 = arith.constant 0 : index
    %324 = vector.load %arg7[%c0_49, %c0_50, %c0_51] : memref<1x1x16xf32, #tpu.memory_space<vmem>>, vector<1x1x16xf32>
    tpu.vector_store %arg7[%c0_49, %c0_50, %c0_51], %323 {strides = array<i32>} : memref<1x1x16xf32, #tpu.memory_space<vmem>>, vector<1x1x16xf32>,
    return
  }
  func.func @transform_0(%arg0: i32) -> (i32, i32, i32) {
    %c0_i32 = arith.constant 0 : i32
    %c0_i32_0 = arith.constant 0 : i32
    %c0_i32_1 = arith.constant 0 : i32
    return %c0_i32, %arg0, %c0_i32_0 : i32, i32, i32
  }
  func.func @transform_1(%arg0: i32) -> (i32, i32) {
    %c0_i32 = arith.constant 0 : i32
    %c0_i32_0 = arith.constant 0 : i32
    %c0_i32_1 = arith.constant 0 : i32
    return %c0_i32, %c0_i32_0 : i32, i32
  }
  func.func @transform_2(%arg0: i32) -> (i32, i32) {
    %c0_i32 = arith.constant 0 : i32
    %c0_i32_0 = arith.constant 0 : i32
    %c0_i32_1 = arith.constant 0 : i32
    return %c0_i32, %c0_i32_0 : i32, i32
  }
  func.func @transform_3(%arg0: i32) -> (i32, i32) {
    %c0_i32 = arith.constant 0 : i32
    %c0_i32_0 = arith.constant 0 : i32
    %c0_i32_1 = arith.constant 0 : i32
    return %c0_i32, %c0_i32_0 : i32, i32
  }
  func.func @transform_4(%arg0: i32) -> (i32, i32) {
    %c0_i32 = arith.constant 0 : i32
    %c0_i32_0 = arith.constant 0 : i32
    %c0_i32_1 = arith.constant 0 : i32
    return %c0_i32, %c0_i32_0 : i32, i32
  }
  func.func @transform_5(%arg0: i32) -> (i32, i32) {
    %c0_i32 = arith.constant 0 : i32
    %c0_i32_0 = arith.constant 0 : i32
    %c0_i32_1 = arith.constant 0 : i32
    return %c0_i32, %c0_i32_0 : i32, i32
  }
  func.func @transform_6(%arg0: i32) -> (i32, i32, i32) {
    %c0_i32 = arith.constant 0 : i32
    %c0_i32_0 = arith.constant 0 : i32
    %c0_i32_1 = arith.constant 0 : i32
    return %arg0, %c0_i32, %c0_i32_0 : i32, i32, i32
  }
}

</mosaic_0001>

<bundles_post_ra>
// kernel: lstm_forward.1
= control target key start
LH: loop header
LB: loop body
LE: loop exit
PB: predicated region body
PF: predicated region fallthrough
CT: control target
= control target key end

     0   :  { %vm115_vm0 = vcmask 1043456   ;;  %vm90_vm1 = vcmask 64512   ;;  %v1879_v1 = vmov 0.0   ;;  %vm1880_vm2 = vmmov 0   ;;  %s1882_s7 = smov 64   ;;  %s1883_s8 = smov 32   ;;  %s2263_s1 = inlined_call_operand.vmem [shape: bf16[8,128], index: 1, kind: input, shape index: {}]   ;;  %s2264_s2 = inlined_call_operand.vmem [shape: bf16[32,128], index: 2, kind: input, shape index: {}]   ;;  %s2265_s0 = inlined_call_operand.vmem [shape: bf16[8,16,8], index: 0, kind: input, shape index: {}]   ;;  %s2266_s3 = inlined_call_operand.vmem [shape: f32[1,128], index: 3, kind: input, shape index: {}]   ;;  %s2267_s5 = inlined_call_operand.<no memory space> [shape: f32[1,1], index: 5, kind: input, shape index: {}]   ;;  %s2268_s4 = inlined_call_operand.vmem [shape: f32[1,32], index: 4, kind: input, shape index: {}]   ;;  %s2269_s6 = inlined_call_operand.vmem [shape: f32[1,1,16], index: 6, kind: output, shape index: {}]  }
   0x1   :  { %v42_v0 = vld [vmem:[%s2263_s1] sm:$0xf]  ;;  %1598 = vmatprep.subr.bf16.mxu1 %v1879_v1  ;;  %1602 = vmatprep.mubr.msk.bf16.mxu1 %vm1880_vm2, %v1879_v1  ;;  %v1930_v3 = vld [vmem:[%s2264_s2 + $0x8] sm:$0xff]   ;;  %v1881_v7 = vmov 0   ;;  %vm232_vm3 = vcmask 261120   ;;  %vm1462_vm4 = vcmask 122880  }
   0x2   :  { %1733 = vmatprep.subr.msk.bf16.mxu0 %vm115_vm0, %v42_v0  ;;  %v117_v2 = vsel %vm115_vm0, %v42_v0, 0  ;;  %v1741_v4 = vld [vmem:[%s2265_s0] sm:$0xff]   ;;  %1599 = vmatpush3.bf16.msra.mxu1 %v1930_v3  ;;  %v1742_v5 = vld [vmem:[%s2265_s0 + $0x8] sm:$0xff]  }
   0x3   :  { %1581 = vmatpush3.bf16.msra.mxu0 %v117_v2  ;;  %1582 = vmatprep.mubr.msk.bf16.mxu0 %vm90_vm1, %v1741_v4  ;;  %v1945_v6 = vld [vmem:[%s2264_s2] sm:$0xff]  }
   0x4   :  { %1630 = vmatprep.subr.bf16.mxu0 %v1879_v1  ;;  %1600 = vmatprep.subr.bf16.mxu1 %v1879_v1  ;;  %v1971_v9 = vld [vmem:[%s2266_s3] ss:$0 sm:$0xff] }
   0x5   :  { %1739 = vset.pattern.permute.xlu0 %v1881_v7 }
   0x6   :  { %1583 = vmatmul.mubr.msk.bf16.vlgmr.msra.gmra.mxu0 %vm90_vm1, %v1742_v5  ;;  %1601 = vmatpush3.bf16.msra.mxu1 %v1945_v6 }
   0x7   :  { %1631 = vmatpush3.bf16.msra.mxu0 %v1930_v3  ;;  %1606 = vmatprep.subr.bf16.mxu1 %v1879_v1 }
   0x8   :  { %1632 = vmatprep.subr.bf16.mxu0 %v1879_v1 }
   0x9   :  { %1603 = vmatmul.mubr.bf16.vlgmr.msra.gmra.mxu1 %v1881_v7 }
   0xa   :  { %1607 = vmatpush3.bf16.msra.mxu1 %v1930_v3  ;;  %1610 = vmatprep.mubr.msk.bf16.mxu1 %vm1880_vm2, %v1879_v1 }
   0xb   :  { %1633 = vmatpush3.bf16.msra.mxu0 %v1945_v6  ;;  %1608 = vmatprep.subr.bf16.mxu1 %v1879_v1 }
   0xc   :  { %1646 = vmatprep.subr.bf16.mxu0 %v1879_v1 }
   0xe   :  { %1609 = vmatpush3.bf16.msra.mxu1 %v1945_v6 }
   0xf   :  { %1614 = vmatprep.subr.bf16.mxu1 %v1879_v1 }
  0x11   :  { %1611 = vmatmul.mubr.bf16.vlgmr.msra.gmra.mxu1 %v1881_v7 }
  0x12   :  { %1615 = vmatpush3.bf16.msra.mxu1 %v1930_v3  ;;  %1618 = vmatprep.mubr.msk.bf16.mxu1 %vm1880_vm2, %v1879_v1 }
  0x13   :  { %1616 = vmatprep.subr.bf16.mxu1 %v1879_v1 }
  0x16   :  { %1617 = vmatpush3.bf16.msra.mxu1 %v1945_v6 }
  0x17   :  { %1622 = vmatprep.subr.bf16.mxu1 %v1879_v1 }
  0xc6   :  { %v1966_v8 = vpop.f32.mrf.mxu0 }
  0xc7   :  { %v162_v55 = vadd.f32 %v1966_v8, %v1971_v9 }
  0xc8   :  { %v153_v10 = vpop.f32.mrf.mxu0 }
  0xc9   :  { %v154_v11 = vadd.f32 %v1971_v9, %v153_v10  ;;  %v270_v13 = vpop.f32.mrf.mxu1 }
  0xca   :  { %v1974_v12 = vpop.f32.mrf.mxu0 }
  0xcb   :  { %v271_v14 = vadd.f32 %v270_v13, %v154_v11  ;;  %v1604_v15 = vpop.f32.mrf.mxu1  ;;  %v165_v61 = vadd.f32 %v1974_v12, %v1971_v9 }
  0xcc   :  { %v156_v16 = vpop.f32.mrf.mxu0 }
  0xcd   :  { %1750 = vtanh.f32 %v271_v14  ;;  %v273_v17 = vpop.f32.mrf.mxu1  ;;  %v157_v19 = vadd.f32 %v1971_v9, %v156_v16  ;;  %v1487_v27 = vmul.f32 -1.442695, %v271_v14 }
  0xcf   :  { %v1605_v18 = vpop.f32.mrf.mxu1 }
  0xd1   :  { %v335_v20 = vpop.f32.mrf.mxu1 }
  0xd2   :  { %v336_v21 = vadd.f32 %v335_v20, %v157_v19 }
  0xd3   :  { %v1612_v22 = vpop.f32.mrf.mxu1 }
  0xd4   :  { %1752 = vtanh.f32 %v336_v21  ;;  %v1488_v28 = vmul.f32 -1.442695, %v336_v21 }
  0xd5   :  { %v338_v23 = vpop.f32.mrf.mxu1  ;;  %1754 = vpow2.f32 %v1487_v27 }
  0xd6   :  { %1756 = vpow2.f32 %v1488_v28  ;;  %v1744_v28 = vld [vmem:[%s2265_s0 + $0x10] sm:$0xff]  }
  0xd7   :  { %v1613_v24 = vpop.f32.mrf.mxu1  ;;  %1586 = vmatprep.mubr.msk.bf16.mxu0 %vm90_vm1, %v1744_v28 }
  0xda   :  { %v1751_v25 = vpop.eup %1750 }
  0xdb   :  { %285 = vrot.lane.b32.xlu0 %v1751_v25, %s1882_s7 }
  0xe1   :  { %v1753_v26 = vpop.eup %1752 }
  0xe2   :  { %350 = vrot.lane.b32.xlu0 %v1753_v26, %s1882_s7  ;;  %v1755_v29 = vpop.eup %1754 }
  0xe3   :  { %v279_v30 = vadd.f32 1.0, %v1755_v29  ;;  %v1757_v31 = vpop.eup %1756  ;;  %v1745_v29 = vld [vmem:[%s2265_s0 + $0x18] sm:$0xff]  }
  0xe4   :  { %v344_v32 = vadd.f32 1.0, %v1757_v31  ;;  %1587 = vmatmul.mubr.msk.bf16.gmra.mxu0 %vm90_vm1, %v1745_v29  ;;  %v1747_v31 = vld [vmem:[%s2265_s0 + $0x28] sm:$0xff]  }
  0xe5   :  { %1758 = vrcp.f32 %v279_v30  ;;  %v1746_v30 = vld [vmem:[%s2265_s0 + $0x20] sm:$0xff]  }
  0xe6   :  { %1760 = vrcp.f32 %v344_v32  ;;  %1590 = vmatprep.mubr.msk.bf16.mxu0 %vm90_vm1, %v1746_v30 }
  0xec   :  { %1591 = vmatmul.mubr.msk.bf16.gmra.mxu0 %vm90_vm1, %v1747_v31 }
  0xf2   :  { %v1759_v33 = vpop.eup %1758 }
  0xf3   :  { %v1761_v36 = vpop.eup %1760  ;;  %v283_v39 = vmul.f32 0.0, %v1759_v33 }
  0xf4   :  { %v348_v42 = vmul.f32 0.0, %v1761_v36 }
 0x14d   :  { %v286_v34 = vpop.permute.xlu0 %285 }
 0x14e   :  { %v288_v35 = vmul.f32 %v1759_v33, %v286_v34  ;;  %v1749_v34 = vld [vmem:[%s2265_s0 + $0x38] sm:$0xff]  }
 0x150   :  { %290 = vrot.lane.b32.xlu1 %v288_v35, %s1883_s8 }
 0x154   :  { %v351_v37 = vpop.permute.xlu0 %350 }
 0x155   :  { %v353_v38 = vmul.f32 %v1761_v36, %v351_v37 }
 0x157   :  { %355 = vrot.lane.b32.xlu1 %v353_v38, %s1883_s8 }
 0x1c2   :  { %v291_v40 = vpop.permute.xlu1 %290 }
 0x1c3   :  { %v1981_v41 = vadd.f32 %v291_v40, %v283_v39 }
 0x1c5   :  { %1762 = vtanh.f32 %v1981_v41 }
 0x1c9   :  { %v356_v43 = vpop.permute.xlu1 %355 }
 0x1ca   :  { %v1984_v44 = vadd.f32 %v356_v43, %v348_v42  ;;  %v2065_v43 = vpop.f32.mrf.mxu0 }
 0x1cc   :  { %1764 = vtanh.f32 %v1984_v44 }
 0x1d2   :  { %v1763_v45 = vpop.eup %1762 }
 0x1d3   :  { %296 = vrot.lane.b32.xlu0 %v1763_v45, %s1882_s7 }
 0x1d9   :  { %v1765_v46 = vpop.eup %1764 }
 0x1da   :  { %361 = vrot.lane.b32.xlu1 %v1765_v46, %s1882_s7 }
 0x245   :  { %v297_v47 = vpop.permute.xlu0 %296 }
 0x246   :  { %v299_v48 = vmul.f32 %v1759_v33, %v297_v47  ;;  %v1748_v33 = vld [vmem:[%s2265_s0 + $0x30] sm:$0xff]  }
 0x247   :  { %1594 = vmatprep.mubr.msk.bf16.mxu0 %vm90_vm1, %v1748_v33 }
 0x248   :  { %v300_v49 = vpack.c.bf16 %v299_v48, %v299_v48  ;;  %1595 = vmatmul.mubr.msk.bf16.gmra.mxu0 %vm90_vm1, %v1749_v34 }
 0x249   :  { %1634 = vmatprep.mubr.msk.bf16.mxu0 %vm1880_vm2, %v1879_v1 }
 0x24a   :  { %367 = vrot.lane.b32.xlu0 %v300_v49, %s1883_s8 }
 0x24c   :  { %v362_v50 = vpop.permute.xlu1 %361 }
 0x24d   :  { %v364_v51 = vmul.f32 %v1761_v36, %v362_v50 }
 0x24f   :  { %v365_v52 = vpack.c.bf16 %v364_v51, %v364_v51 }
 0x251   :  { %438 = vrot.lane.b32.xlu1 %v365_v52, %s1883_s8 }
 0x2bc   :  { %v368_v53 = vpop.permute.xlu0 %367 }
 0x2bd   :  { %1619 = vmatmul.mubr.msk.bf16.vlgmr.msra.gmra.mxu1 %vm232_vm3, %v368_v53 }
 0x2be   :  { %1623 = vmatpush3.bf16.msra.mxu1 %v1930_v3  ;;  %1626 = vmatprep.mubr.msk.bf16.mxu1 %vm1880_vm2, %v1879_v1 }
 0x2bf   :  { %1624 = vmatprep.subr.bf16.mxu1 %v1879_v1 }
 0x2c2   :  { %1625 = vmatpush3.bf16.msra.mxu1 %v1945_v6 }
 0x2c3   :  { %1638 = vmatprep.subr.bf16.mxu1 %v1879_v1  ;;  %v439_v54 = vpop.permute.xlu1 %438 }
 0x2c5   :  { %1627 = vmatmul.mubr.msk.bf16.vlgmr.msra.gmra.mxu1 %vm232_vm3, %v439_v54 }
 0x2c6   :  { %1639 = vmatpush3.bf16.msra.mxu1 %v1930_v3  ;;  %1642 = vmatprep.mubr.msk.bf16.mxu1 %vm1880_vm2, %v1879_v1 }
 0x2c7   :  { %1640 = vmatprep.subr.bf16.mxu1 %v1879_v1 }
 0x2ca   :  { %1641 = vmatpush3.bf16.msra.mxu1 %v1945_v6 }
 0x2cb   :  { %1654 = vmatprep.subr.bf16.mxu1 %v1879_v1 }
 0x37d   :  { %v406_v56 = vpop.f32.mrf.mxu1 }
 0x37e   :  { %v407_v57 = vadd.f32 %v406_v56, %v162_v55 }
 0x37f   :  { %v1620_v58 = vpop.f32.mrf.mxu1 }
 0x380   :  { %1766 = vtanh.f32 %v407_v57  ;;  %v1490_v8 = vmul.f32 -1.442695, %v407_v57 }
 0x381   :  { %v409_v59 = vpop.f32.mrf.mxu1 }
 0x383   :  { %v1621_v60 = vpop.f32.mrf.mxu1 }
 0x385   :  { %v477_v62 = vpop.f32.mrf.mxu1 }
 0x386   :  { %v478_v63 = vadd.f32 %v477_v62, %v165_v61 }
 0x387   :  { %v1628_v0 = vpop.f32.mrf.mxu1 }
 0x388   :  { %1768 = vtanh.f32 %v478_v63  ;;  %v1492_v10 = vmul.f32 -1.442695, %v478_v63 }
 0x389   :  { %v480_v2 = vpop.f32.mrf.mxu1  ;;  %1770 = vpow2.f32 %v1490_v8 }
 0x38a   :  { %1772 = vpow2.f32 %v1492_v10 }
 0x38b   :  { %v1629_v4 = vpop.f32.mrf.mxu1 }
 0x38d   :  { %v1767_v5 = vpop.eup %1766 }
 0x38e   :  { %421 = vrot.lane.b32.xlu1 %v1767_v5, %s1882_s7 }
 0x395   :  { %v1769_v7 = vpop.eup %1768 }
 0x396   :  { %492 = vrot.lane.b32.xlu0 %v1769_v7, %s1882_s7  ;;  %v1771_v11 = vpop.eup %1770 }
 0x397   :  { %v415_v13 = vadd.f32 1.0, %v1771_v11  ;;  %v1773_v12 = vpop.eup %1772 }
 0x398   :  { %v486_v14 = vadd.f32 1.0, %v1773_v12 }
 0x399   :  { %1774 = vrcp.f32 %v415_v13 }
 0x39a   :  { %1776 = vrcp.f32 %v486_v14 }
 0x3a6   :  { %v1775_v15 = vpop.eup %1774 }
 0x3a7   :  { %v1777_v18 = vpop.eup %1776  ;;  %v419_v21 = vmul.f32 %v1775_v15, %v1981_v41 }
 0x3a8   :  { %v490_v24 = vmul.f32 %v1777_v18, %v1984_v44  ;;  %v169_v44 = vpop.f32.mrf.mxu0 }
 0x3a9   :  { %v170_v55 = vadd.f32 %v1971_v9, %v169_v44 }
 0x3aa   :  { %v2067_v45 = vpop.f32.mrf.mxu0 }
 0x3ab   :  { %v181_v44 = vadd.f32 %v2067_v45, %v1971_v9 }
 0x3ac   :  { %v172_v46 = vpop.f32.mrf.mxu0 }
 0x3ad   :  { %v173_v61 = vadd.f32 %v1971_v9, %v172_v46 }
 0x3ae   :  { %v2069_v47 = vpop.f32.mrf.mxu0 }
 0x3b0   :  { %v2071_v48 = vpop.f32.mrf.mxu0 }
 0x3b2   :  { %v2073_v49 = vpop.f32.mrf.mxu0 }
 0x3b4   :  { %v2075_v50 = vpop.f32.mrf.mxu0 }
 0x3b6   :  { %v2077_v51 = vpop.f32.mrf.mxu0 }
 0x3b8   :  { %v2079_v52 = vpop.f32.mrf.mxu0 }
 0x3ba   :  { %v2081_v53 = vpop.f32.mrf.mxu0 }
 0x3bc   :  { %v2083_v54 = vpop.f32.mrf.mxu0 }
 0x400   :  { %v422_v16 = vpop.permute.xlu1 %421 }
 0x401   :  { %v424_v17 = vmul.f32 %v1775_v15, %v422_v16 }
 0x403   :  { %426 = vrot.lane.b32.xlu1 %v424_v17, %s1883_s8 }
 0x408   :  { %v493_v19 = vpop.permute.xlu0 %492 }
 0x409   :  { %v495_v20 = vmul.f32 %v1777_v18, %v493_v19 }
 0x40b   :  { %497 = vrot.lane.b32.xlu0 %v495_v20, %s1883_s8 }
 0x475   :  { %v427_v22 = vpop.permute.xlu1 %426 }
 0x476   :  { %v2014_v23 = vadd.f32 %v427_v22, %v419_v21 }
 0x478   :  { %1778 = vtanh.f32 %v2014_v23 }
 0x47d   :  { %v498_v25 = vpop.permute.xlu0 %497 }
 0x47e   :  { %v2018_v26 = vadd.f32 %v498_v25, %v490_v24 }
 0x480   :  { %1780 = vtanh.f32 %v2018_v26 }
 0x485   :  { %v1779_v27 = vpop.eup %1778 }
 0x486   :  { %432 = vrot.lane.b32.xlu1 %v1779_v27, %s1882_s7 }
 0x48d   :  { %v1781_v32 = vpop.eup %1780 }
 0x48e   :  { %503 = vrot.lane.b32.xlu0 %v1781_v32, %s1882_s7 }
 0x4f8   :  { %v433_v35 = vpop.permute.xlu1 %432 }
 0x4f9   :  { %v435_v36 = vmul.f32 %v1775_v15, %v433_v35 }
 0x4fb   :  { %v436_v37 = vpack.c.bf16 %v435_v36, %v435_v36 }
 0x4fd   :  { %509 = vrot.lane.b32.xlu1 %v436_v37, %s1883_s8  ;;  %v178_v37 = vadd.f32 %v2065_v43, %v1971_v9 }
 0x500   :  { %v504_v38 = vpop.permute.xlu0 %503 }
 0x501   :  { %v506_v39 = vmul.f32 %v1777_v18, %v504_v38 }
 0x503   :  { %v507_v40 = vpack.c.bf16 %v506_v39, %v506_v39 }
 0x505   :  { %580 = vrot.lane.b32.xlu0 %v507_v40, %s1883_s8 }
 0x56f   :  { %v510_v41 = vpop.permute.xlu1 %509 }
 0x570   :  { %1635 = vmatmul.mubr.msk.bf16.vlgmr.msra.gmra.mxu0 %vm232_vm3, %v510_v41 }
 0x571   :  { %1647 = vmatpush3.bf16.msra.mxu0 %v1930_v3  ;;  %1650 = vmatprep.mubr.msk.bf16.mxu0 %vm1880_vm2, %v1879_v1 }
 0x572   :  { %1648 = vmatprep.subr.bf16.mxu0 %v1879_v1 }
 0x575   :  { %1649 = vmatpush3.bf16.msra.mxu0 %v1945_v6 }
 0x576   :  { %1662 = vmatprep.subr.bf16.mxu0 %v1879_v1 }
 0x577   :  { %v581_v42 = vpop.permute.xlu0 %580 }
 0x578   :  { %1643 = vmatmul.mubr.msk.bf16.vlgmr.msra.gmra.mxu1 %vm232_vm3, %v581_v42 }
 0x579   :  { %1655 = vmatpush3.bf16.msra.mxu1 %v1930_v3  ;;  %1658 = vmatprep.mubr.msk.bf16.mxu1 %vm1880_vm2, %v1879_v1 }
 0x57a   :  { %1656 = vmatprep.subr.bf16.mxu1 %v1879_v1 }
 0x57d   :  { %1657 = vmatpush3.bf16.msra.mxu1 %v1945_v6 }
 0x57e   :  { %1670 = vmatprep.subr.bf16.mxu1 %v1879_v1 }
 0x630   :  { %v548_v56 = vpop.f32.mrf.mxu0 }
 0x631   :  { %v549_v57 = vadd.f32 %v548_v56, %v170_v55 }
 0x632   :  { %v1636_v58 = vpop.f32.mrf.mxu0 }
 0x633   :  { %1782 = vtanh.f32 %v549_v57  ;;  %v1494_v8 = vmul.f32 -1.442695, %v549_v57 }
 0x634   :  { %v551_v59 = vpop.f32.mrf.mxu0 }
 0x636   :  { %v1637_v60 = vpop.f32.mrf.mxu0 }
 0x638   :  { %v619_v62 = vpop.f32.mrf.mxu1 }
 0x639   :  { %v620_v63 = vadd.f32 %v619_v62, %v173_v61 }
 0x63a   :  { %v1644_v0 = vpop.f32.mrf.mxu1 }
 0x63b   :  { %1784 = vtanh.f32 %v620_v63  ;;  %v1496_v10 = vmul.f32 -1.442695, %v620_v63 }
 0x63c   :  { %v622_v2 = vpop.f32.mrf.mxu1  ;;  %1786 = vpow2.f32 %v1494_v8 }
 0x63d   :  { %1788 = vpow2.f32 %v1496_v10 }
 0x63e   :  { %v1645_v4 = vpop.f32.mrf.mxu1 }
 0x640   :  { %v1783_v5 = vpop.eup %1782 }
 0x641   :  { %563 = vrot.lane.b32.xlu1 %v1783_v5, %s1882_s7 }
 0x648   :  { %v1785_v7 = vpop.eup %1784 }
 0x649   :  { %634 = vrot.lane.b32.xlu0 %v1785_v7, %s1882_s7  ;;  %v1787_v11 = vpop.eup %1786 }
 0x64a   :  { %v557_v13 = vadd.f32 1.0, %v1787_v11  ;;  %v1789_v12 = vpop.eup %1788 }
 0x64b   :  { %v628_v14 = vadd.f32 1.0, %v1789_v12 }
 0x64c   :  { %1790 = vrcp.f32 %v557_v13 }
 0x64d   :  { %1792 = vrcp.f32 %v628_v14 }
 0x659   :  { %v1791_v15 = vpop.eup %1790 }
 0x65a   :  { %v1793_v18 = vpop.eup %1792  ;;  %v561_v21 = vmul.f32 %v1791_v15, %v2014_v23 }
 0x65b   :  { %v632_v25 = vmul.f32 %v1793_v18, %v2018_v26 }
 0x6b3   :  { %v564_v16 = vpop.permute.xlu1 %563 }
 0x6b4   :  { %v566_v17 = vmul.f32 %v1791_v15, %v564_v16 }
 0x6b6   :  { %568 = vrot.lane.b32.xlu1 %v566_v17, %s1883_s8 }
 0x6bb   :  { %v635_v19 = vpop.permute.xlu0 %634 }
 0x6bc   :  { %v637_v20 = vmul.f32 %v1793_v18, %v635_v19 }
 0x6be   :  { %639 = vrot.lane.b32.xlu0 %v637_v20, %s1883_s8 }
 0x728   :  { %v569_v22 = vpop.permute.xlu1 %568 }
 0x729   :  { %v2092_v24 = vadd.f32 %v569_v22, %v561_v21 }
 0x72b   :  { %1794 = vtanh.f32 %v2092_v24 }
 0x730   :  { %v640_v27 = vpop.permute.xlu0 %639 }
 0x731   :  { %v2096_v28 = vadd.f32 %v640_v27, %v632_v25 }
 0x733   :  { %1796 = vtanh.f32 %v2096_v28 }
 0x738   :  { %v1795_v29 = vpop.eup %1794 }
 0x739   :  { %574 = vrot.lane.b32.xlu1 %v1795_v29, %s1882_s7  ;;  %v186_v29 = vadd.f32 %v1971_v9, %v2071_v48 }
 0x740   :  { %v1797_v30 = vpop.eup %1796 }
 0x741   :  { %645 = vrot.lane.b32.xlu0 %v1797_v30, %s1882_s7 }
 0x7ab   :  { %v575_v31 = vpop.permute.xlu1 %574 }
 0x7ac   :  { %v577_v23 = vmul.f32 %v1791_v15, %v575_v31 }
 0x7ae   :  { %v578_v32 = vpack.c.bf16 %v577_v23, %v577_v23 }
 0x7b0   :  { %651 = vrot.lane.b32.xlu1 %v578_v32, %s1883_s8 }
 0x7b3   :  { %v646_v33 = vpop.permute.xlu0 %645 }
 0x7b4   :  { %v648_v34 = vmul.f32 %v1793_v18, %v646_v33 }
 0x7b6   :  { %v649_v35 = vpack.c.bf16 %v648_v34, %v648_v34  ;;  %v189_v34 = vadd.f32 %v1971_v9, %v2075_v50 }
 0x7b8   :  { %722 = vrot.lane.b32.xlu0 %v649_v35, %s1883_s8 }
 0x822   :  { %v652_v26 = vpop.permute.xlu1 %651 }
 0x823   :  { %1651 = vmatmul.mubr.msk.bf16.vlgmr.msra.gmra.mxu0 %vm232_vm3, %v652_v26 }
 0x824   :  { %1663 = vmatpush3.bf16.msra.mxu0 %v1930_v3  ;;  %1666 = vmatprep.mubr.msk.bf16.mxu0 %vm1880_vm2, %v1879_v1 }
 0x825   :  { %1664 = vmatprep.subr.bf16.mxu0 %v1879_v1 }
 0x828   :  { %1665 = vmatpush3.bf16.msra.mxu0 %v1945_v6 }
 0x829   :  { %1678 = vmatprep.subr.bf16.mxu0 %v1879_v1 }
 0x82a   :  { %v723_v36 = vpop.permute.xlu0 %722 }
 0x82b   :  { %1659 = vmatmul.mubr.msk.bf16.vlgmr.msra.gmra.mxu1 %vm232_vm3, %v723_v36 }
 0x82c   :  { %1671 = vmatpush3.bf16.msra.mxu1 %v1930_v3  ;;  %1674 = vmatprep.mubr.msk.bf16.mxu1 %vm1880_vm2, %v1879_v1 }
 0x82d   :  { %1672 = vmatprep.subr.bf16.mxu1 %v1879_v1 }
 0x830   :  { %1673 = vmatpush3.bf16.msra.mxu1 %v1945_v6 }
 0x831   :  { %1686 = vmatprep.subr.bf16.mxu1 %v1879_v1 }
 0x8e3   :  { %v690_v38 = vpop.f32.mrf.mxu0 }
 0x8e4   :  { %v691_v39 = vadd.f32 %v690_v38, %v178_v37 }
 0x8e5   :  { %v1652_v40 = vpop.f32.mrf.mxu0 }
 0x8e6   :  { %1798 = vtanh.f32 %v691_v39  ;;  %v1498_v43 = vmul.f32 -1.442695, %v691_v39 }
 0x8e7   :  { %v693_v41 = vpop.f32.mrf.mxu0 }
 0x8e9   :  { %v1653_v42 = vpop.f32.mrf.mxu0 }
 0x8eb   :  { %v761_v46 = vpop.f32.mrf.mxu1 }
 0x8ec   :  { %v762_v55 = vadd.f32 %v761_v46, %v181_v44 }
 0x8ed   :  { %v1660_v56 = vpop.f32.mrf.mxu1 }
 0x8ee   :  { %1800 = vtanh.f32 %v762_v55  ;;  %v1500_v61 = vmul.f32 -1.442695, %v762_v55 }
 0x8ef   :  { %v764_v57 = vpop.f32.mrf.mxu1  ;;  %1802 = vpow2.f32 %v1498_v43 }
 0x8f0   :  { %1804 = vpow2.f32 %v1500_v61 }
 0x8f1   :  { %v1661_v58 = vpop.f32.mrf.mxu1 }
 0x8f3   :  { %v1799_v59 = vpop.eup %1798 }
 0x8f4   :  { %705 = vrot.lane.b32.xlu1 %v1799_v59, %s1882_s7 }
 0x8fb   :  { %v1801_v60 = vpop.eup %1800 }
 0x8fc   :  { %776 = vrot.lane.b32.xlu0 %v1801_v60, %s1882_s7  ;;  %v1803_v62 = vpop.eup %1802 }
 0x8fd   :  { %v699_v63 = vadd.f32 1.0, %v1803_v62  ;;  %v1805_v45 = vpop.eup %1804 }
 0x8fe   :  { %v770_v0 = vadd.f32 1.0, %v1805_v45 }
 0x8ff   :  { %1806 = vrcp.f32 %v699_v63 }
 0x900   :  { %1808 = vrcp.f32 %v770_v0 }
 0x90c   :  { %v1807_v2 = vpop.eup %1806 }
 0x90d   :  { %v1809_v7 = vpop.eup %1808  ;;  %v703_v11 = vmul.f32 %v1807_v2, %v2092_v24 }
 0x90e   :  { %v774_v14 = vmul.f32 %v1809_v7, %v2096_v28 }
 0x966   :  { %v706_v4 = vpop.permute.xlu1 %705 }
 0x967   :  { %v708_v5 = vmul.f32 %v1807_v2, %v706_v4 }
 0x969   :  { %710 = vrot.lane.b32.xlu1 %v708_v5, %s1883_s8 }
 0x96e   :  { %v777_v8 = vpop.permute.xlu0 %776 }
 0x96f   :  { %v779_v10 = vmul.f32 %v1809_v7, %v777_v8 }
 0x971   :  { %781 = vrot.lane.b32.xlu0 %v779_v10, %s1883_s8 }
 0x9db   :  { %v711_v13 = vpop.permute.xlu1 %710 }
 0x9dc   :  { %v2126_v12 = vadd.f32 %v711_v13, %v703_v11 }
 0x9de   :  { %1810 = vtanh.f32 %v2126_v12 }
 0x9e3   :  { %v782_v15 = vpop.permute.xlu0 %781 }
 0x9e4   :  { %v2130_v16 = vadd.f32 %v782_v15, %v774_v14  ;;  %v194_v15 = vadd.f32 %v2069_v47, %v1971_v9 }
 0x9e6   :  { %1812 = vtanh.f32 %v2130_v16 }
 0x9eb   :  { %v1811_v17 = vpop.eup %1810 }
 0x9ec   :  { %716 = vrot.lane.b32.xlu1 %v1811_v17, %s1882_s7 }
 0x9f3   :  { %v1813_v18 = vpop.eup %1812 }
 0x9f4   :  { %787 = vrot.lane.b32.xlu0 %v1813_v18, %s1882_s7 }
 0xa5e   :  { %v717_v19 = vpop.permute.xlu1 %716 }
 0xa5f   :  { %v719_v20 = vmul.f32 %v1807_v2, %v717_v19 }
 0xa61   :  { %v720_v21 = vpack.c.bf16 %v719_v20, %v719_v20 }
 0xa63   :  { %793 = vrot.lane.b32.xlu1 %v720_v21, %s1883_s8  ;;  %v197_v21 = vadd.f32 %v2073_v49, %v1971_v9 }
 0xa66   :  { %v788_v22 = vpop.permute.xlu0 %787 }
 0xa67   :  { %v790_v24 = vmul.f32 %v1809_v7, %v788_v22 }
 0xa69   :  { %v791_v25 = vpack.c.bf16 %v790_v24, %v790_v24 }
 0xa6b   :  { %864 = vrot.lane.b32.xlu0 %v791_v25, %s1883_s8 }
 0xad5   :  { %v794_v27 = vpop.permute.xlu1 %793 }
 0xad6   :  { %1667 = vmatmul.mubr.msk.bf16.vlgmr.msra.gmra.mxu0 %vm232_vm3, %v794_v27 }
 0xad7   :  { %1679 = vmatpush3.bf16.msra.mxu0 %v1930_v3  ;;  %1682 = vmatprep.mubr.msk.bf16.mxu0 %vm1880_vm2, %v1879_v1 }
 0xad8   :  { %1680 = vmatprep.subr.bf16.mxu0 %v1879_v1 }
 0xadb   :  { %1681 = vmatpush3.bf16.msra.mxu0 %v1945_v6 }
 0xadc   :  { %1694 = vmatprep.subr.bf16.mxu0 %v1879_v1 }
 0xadd   :  { %v865_v28 = vpop.permute.xlu0 %864 }
 0xade   :  { %1675 = vmatmul.mubr.msk.bf16.vlgmr.msra.gmra.mxu1 %vm232_vm3, %v865_v28 }
 0xadf   :  { %1687 = vmatpush3.bf16.msra.mxu1 %v1930_v3  ;;  %1690 = vmatprep.mubr.msk.bf16.mxu1 %vm1880_vm2, %v1879_v1 }
 0xae0   :  { %1688 = vmatprep.subr.bf16.mxu1 %v1879_v1 }
 0xae3   :  { %1689 = vmatpush3.bf16.msra.mxu1 %v1945_v6 }
 0xae4   :  { %1702 = vmatprep.subr.bf16.mxu1 %v1879_v1 }
 0xb96   :  { %v832_v30 = vpop.f32.mrf.mxu0 }
 0xb97   :  { %v833_v31 = vadd.f32 %v832_v30, %v186_v29 }
 0xb98   :  { %v1668_v23 = vpop.f32.mrf.mxu0 }
 0xb99   :  { %1814 = vtanh.f32 %v833_v31  ;;  %v1502_v48 = vmul.f32 -1.442695, %v833_v31 }
 0xb9a   :  { %v835_v32 = vpop.f32.mrf.mxu0 }
 0xb9c   :  { %v1669_v33 = vpop.f32.mrf.mxu0 }
 0xb9e   :  { %v903_v35 = vpop.f32.mrf.mxu1 }
 0xb9f   :  { %v904_v26 = vadd.f32 %v903_v35, %v189_v34 }
 0xba0   :  { %v1676_v36 = vpop.f32.mrf.mxu1 }
 0xba1   :  { %1816 = vtanh.f32 %v904_v26  ;;  %v1504_v41 = vmul.f32 -1.442695, %v904_v26 }
 0xba2   :  { %v906_v37 = vpop.f32.mrf.mxu1  ;;  %1818 = vpow2.f32 %v1502_v48 }
 0xba3   :  { %1820 = vpow2.f32 %v1504_v41 }
 0xba4   :  { %v1677_v38 = vpop.f32.mrf.mxu1 }
 0xba6   :  { %v1815_v39 = vpop.eup %1814 }
 0xba7   :  { %847 = vrot.lane.b32.xlu1 %v1815_v39, %s1882_s7 }
 0xbae   :  { %v1817_v40 = vpop.eup %1816 }
 0xbaf   :  { %918 = vrot.lane.b32.xlu0 %v1817_v40, %s1882_s7  ;;  %v1819_v42 = vpop.eup %1818 }
 0xbb0   :  { %v841_v44 = vadd.f32 1.0, %v1819_v42  ;;  %v1821_v50 = vpop.eup %1820 }
 0xbb1   :  { %v912_v46 = vadd.f32 1.0, %v1821_v50 }
 0xbb2   :  { %1822 = vrcp.f32 %v841_v44 }
 0xbb3   :  { %1824 = vrcp.f32 %v912_v46 }
 0xbbf   :  { %v1823_v55 = vpop.eup %1822 }
 0xbc0   :  { %v1825_v58 = vpop.eup %1824  ;;  %v845_v43 = vmul.f32 %v1823_v55, %v2126_v12 }
 0xbc1   :  { %v916_v63 = vmul.f32 %v1825_v58, %v2130_v16 }
 0xc19   :  { %v848_v56 = vpop.permute.xlu1 %847 }
 0xc1a   :  { %v850_v57 = vmul.f32 %v1823_v55, %v848_v56 }
 0xc1c   :  { %852 = vrot.lane.b32.xlu1 %v850_v57, %s1883_s8 }
 0xc21   :  { %v919_v59 = vpop.permute.xlu0 %918 }
 0xc22   :  { %v921_v60 = vmul.f32 %v1825_v58, %v919_v59 }
 0xc24   :  { %923 = vrot.lane.b32.xlu0 %v921_v60, %s1883_s8 }
 0xc8e   :  { %v853_v61 = vpop.permute.xlu1 %852 }
 0xc8f   :  { %v2160_v62 = vadd.f32 %v853_v61, %v845_v43 }
 0xc91   :  { %1826 = vtanh.f32 %v2160_v62 }
 0xc96   :  { %v924_v45 = vpop.permute.xlu0 %923 }
 0xc97   :  { %v2164_v0 = vadd.f32 %v924_v45, %v916_v63 }
 0xc99   :  { %1828 = vtanh.f32 %v2164_v0 }
 0xc9e   :  { %v1827_v2 = vpop.eup %1826 }
 0xc9f   :  { %858 = vrot.lane.b32.xlu1 %v1827_v2, %s1882_s7 }
 0xca6   :  { %v1829_v4 = vpop.eup %1828 }
 0xca7   :  { %929 = vrot.lane.b32.xlu0 %v1829_v4, %s1882_s7 }
 0xd11   :  { %v859_v5 = vpop.permute.xlu1 %858 }
 0xd12   :  { %v861_v7 = vmul.f32 %v1823_v55, %v859_v5  ;;  %v205_v5 = vadd.f32 %v1971_v9, %v2083_v54 }
 0xd14   :  { %v862_v8 = vpack.c.bf16 %v861_v7, %v861_v7 }
 0xd16   :  { %935 = vrot.lane.b32.xlu1 %v862_v8, %s1883_s8 }
 0xd19   :  { %v930_v10 = vpop.permute.xlu0 %929 }
 0xd1a   :  { %v932_v11 = vmul.f32 %v1825_v58, %v930_v10 }
 0xd1c   :  { %v933_v13 = vpack.c.bf16 %v932_v11, %v932_v11 }
 0xd1e   :  { %1006 = vrot.lane.b32.xlu0 %v933_v13, %s1883_s8 }
 0xd88   :  { %v936_v12 = vpop.permute.xlu1 %935 }
 0xd89   :  { %1683 = vmatmul.mubr.msk.bf16.vlgmr.msra.gmra.mxu0 %vm232_vm3, %v936_v12 }
 0xd8a   :  { %1695 = vmatpush3.bf16.msra.mxu0 %v1930_v3  ;;  %1698 = vmatprep.mubr.msk.bf16.mxu0 %vm1880_vm2, %v1879_v1 }
 0xd8b   :  { %1696 = vmatprep.subr.bf16.mxu0 %v1879_v1 }
 0xd8e   :  { %1697 = vmatpush3.bf16.msra.mxu0 %v1945_v6 }
 0xd8f   :  { %1710 = vmatprep.subr.bf16.mxu0 %v1879_v1 }
 0xd90   :  { %v1007_v14 = vpop.permute.xlu0 %1006 }
 0xd91   :  { %1691 = vmatmul.mubr.msk.bf16.vlgmr.msra.gmra.mxu1 %vm232_vm3, %v1007_v14 }
 0xd92   :  { %1703 = vmatpush3.bf16.msra.mxu1 %v1930_v3  ;;  %1706 = vmatprep.mubr.msk.bf16.mxu1 %vm1880_vm2, %v1879_v1 }
 0xd93   :  { %1704 = vmatprep.subr.bf16.mxu1 %v1879_v1 }
 0xd96   :  { %1705 = vmatpush3.bf16.msra.mxu1 %v1945_v6 }
 0xd97   :  { %1718 = vmatprep.subr.bf16.mxu1 %v1879_v1 }
 0xe49   :  { %v974_v16 = vpop.f32.mrf.mxu0 }
 0xe4a   :  { %v975_v17 = vadd.f32 %v974_v16, %v194_v15 }
 0xe4b   :  { %v1684_v18 = vpop.f32.mrf.mxu0 }
 0xe4c   :  { %1830 = vtanh.f32 %v975_v17  ;;  %v1506_v47 = vmul.f32 -1.442695, %v975_v17 }
 0xe4d   :  { %v977_v19 = vpop.f32.mrf.mxu0 }
 0xe4f   :  { %v1685_v20 = vpop.f32.mrf.mxu0 }
 0xe51   :  { %v1045_v22 = vpop.f32.mrf.mxu1 }
 0xe52   :  { %v1046_v24 = vadd.f32 %v1045_v22, %v197_v21 }
 0xe53   :  { %v1692_v25 = vpop.f32.mrf.mxu1 }
 0xe54   :  { %1832 = vtanh.f32 %v1046_v24  ;;  %v1508_v31 = vmul.f32 -1.442695, %v1046_v24 }
 0xe55   :  { %v1048_v27 = vpop.f32.mrf.mxu1  ;;  %1834 = vpow2.f32 %v1506_v47 }
 0xe56   :  { %1836 = vpow2.f32 %v1508_v31 }
 0xe57   :  { %v1693_v28 = vpop.f32.mrf.mxu1 }
 0xe59   :  { %v1831_v29 = vpop.eup %1830 }
 0xe5a   :  { %989 = vrot.lane.b32.xlu1 %v1831_v29, %s1882_s7 }
 0xe61   :  { %v1833_v30 = vpop.eup %1832 }
 0xe62   :  { %1060 = vrot.lane.b32.xlu0 %v1833_v30, %s1882_s7  ;;  %v1835_v23 = vpop.eup %1834 }
 0xe63   :  { %v983_v32 = vadd.f32 1.0, %v1835_v23  ;;  %v1837_v49 = vpop.eup %1836 }
 0xe64   :  { %v1054_v33 = vadd.f32 1.0, %v1837_v49 }
 0xe65   :  { %1838 = vrcp.f32 %v983_v32 }
 0xe66   :  { %1840 = vrcp.f32 %v1054_v33 }
 0xe72   :  { %v1839_v34 = vpop.eup %1838 }
 0xe73   :  { %v1841_v36 = vpop.eup %1840  ;;  %v987_v39 = vmul.f32 %v1839_v34, %v2160_v62  ;;  %v202_v62 = vadd.f32 %v1971_v9, %v2079_v52 }
 0xe74   :  { %v1058_v41 = vmul.f32 %v1841_v36, %v2164_v0 }
 0xecc   :  { %v990_v35 = vpop.permute.xlu1 %989 }
 0xecd   :  { %v992_v26 = vmul.f32 %v1839_v34, %v990_v35 }
 0xecf   :  { %994 = vrot.lane.b32.xlu1 %v992_v26, %s1883_s8 }
 0xed4   :  { %v1061_v37 = vpop.permute.xlu0 %1060 }
 0xed5   :  { %v1063_v38 = vmul.f32 %v1841_v36, %v1061_v37 }
 0xed7   :  { %1065 = vrot.lane.b32.xlu0 %v1063_v38, %s1883_s8 }
 0xf41   :  { %v995_v40 = vpop.permute.xlu1 %994 }
 0xf42   :  { %v2194_v48 = vadd.f32 %v995_v40, %v987_v39 }
 0xf44   :  { %1842 = vtanh.f32 %v2194_v48 }
 0xf49   :  { %v1066_v42 = vpop.permute.xlu0 %1065 }
 0xf4a   :  { %v2198_v44 = vadd.f32 %v1066_v42, %v1058_v41 }
 0xf4c   :  { %1844 = vtanh.f32 %v2198_v44 }
 0xf51   :  { %v1843_v50 = vpop.eup %1842 }
 0xf52   :  { %1000 = vrot.lane.b32.xlu1 %v1843_v50, %s1882_s7 }
 0xf59   :  { %v1845_v46 = vpop.eup %1844 }
 0xf5a   :  { %1071 = vrot.lane.b32.xlu0 %v1845_v46, %s1882_s7 }
 0xfc4   :  { %v1001_v55 = vpop.permute.xlu1 %1000 }
 0xfc5   :  { %v1003_v56 = vmul.f32 %v1839_v34, %v1001_v55 }
 0xfc7   :  { %v1004_v57 = vpack.c.bf16 %v1003_v56, %v1003_v56 }
 0xfc9   :  { %1077 = vrot.lane.b32.xlu1 %v1004_v57, %s1883_s8 }
 0xfcc   :  { %v1072_v58 = vpop.permute.xlu0 %1071 }
 0xfcd   :  { %v1074_v59 = vmul.f32 %v1841_v36, %v1072_v58  ;;  %v1878_v36 = vld [vmem:[%s2266_s3] ss:$0 sm:$0xff] }
 0xfce   :  { %v210_v37 = vadd.f32 %v1878_v36, %v2077_v51  ;;  %v213_v42 = vadd.f32 %v1878_v36, %v2081_v53 }
 0xfcf   :  { %v1075_v60 = vpack.c.bf16 %v1074_v59, %v1074_v59 }
 0xfd1   :  { %1148 = vrot.lane.b32.xlu0 %v1075_v60, %s1883_s8 }
0x103b   :  { %v1078_v43 = vpop.permute.xlu1 %1077 }
0x103c   :  { %1699 = vmatmul.mubr.msk.bf16.vlgmr.msra.gmra.mxu0 %vm232_vm3, %v1078_v43 }
0x103d   :  { %1711 = vmatpush3.bf16.msra.mxu0 %v1930_v3  ;;  %1714 = vmatprep.mubr.msk.bf16.mxu0 %vm1880_vm2, %v1879_v1 }
0x103e   :  { %1712 = vmatprep.subr.bf16.mxu0 %v1879_v1 }
0x1041   :  { %1713 = vmatpush3.bf16.msra.mxu0 %v1945_v6 }
0x1042   :  { %1726 = vmatprep.subr.mxu0 %v1879_v1 }
0x1043   :  { %v1149_v61 = vpop.permute.xlu0 %1148 }
0x1044   :  { %1707 = vmatmul.mubr.msk.bf16.vlgmr.msra.gmra.mxu1 %vm232_vm3, %v1149_v61 }
0x1045   :  { %1719 = vmatpush3.bf16.msra.mxu1 %v1930_v3  ;;  %1722 = vmatprep.mubr.msk.bf16.mxu1 %vm1880_vm2, %v1879_v1 }
0x1046   :  { %1720 = vmatprep.subr.bf16.mxu1 %v1879_v1 }
0x1049   :  { %1721 = vmatpush3.bf16.msra.mxu1 %v1945_v6 }
0x10fc   :  { %v1116_v63 = vpop.f32.mrf.mxu0 }
0x10fd   :  { %v1117_v45 = vadd.f32 %v1116_v63, %v202_v62 }
0x10fe   :  { %v1700_v0 = vpop.f32.mrf.mxu0 }
0x10ff   :  { %1846 = vtanh.f32 %v1117_v45  ;;  %v1510_v52 = vmul.f32 -1.442695, %v1117_v45 }
0x1100   :  { %v1119_v2 = vpop.f32.mrf.mxu0 }
0x1102   :  { %v1701_v4 = vpop.f32.mrf.mxu0 }
0x1104   :  { %v1187_v3 = vpop.f32.mrf.mxu1 }
0x1105   :  { %v1188_v7 = vadd.f32 %v1187_v3, %v205_v5 }
0x1106   :  { %v1708_v8 = vpop.f32.mrf.mxu1 }
0x1107   :  { %1848 = vtanh.f32 %v1188_v7  ;;  %v1512_v12 = vmul.f32 -1.442695, %v1188_v7 }
0x1108   :  { %v1190_v10 = vpop.f32.mrf.mxu1  ;;  %1850 = vpow2.f32 %v1510_v52 }
0x1109   :  { %1852 = vpow2.f32 %v1512_v12 }
0x110a   :  { %v1709_v11 = vpop.f32.mrf.mxu1 }
0x110c   :  { %v1847_v13 = vpop.eup %1846 }
0x110d   :  { %1131 = vrot.lane.b32.xlu1 %v1847_v13, %s1882_s7 }
0x1114   :  { %v1849_v6 = vpop.eup %1848 }
0x1115   :  { %1202 = vrot.lane.b32.xlu0 %v1849_v6, %s1882_s7  ;;  %v1851_v14 = vpop.eup %1850 }
0x1116   :  { %v1125_v15 = vadd.f32 1.0, %v1851_v14  ;;  %v1853_v9 = vpop.eup %1852 }
0x1117   :  { %v1196_v54 = vadd.f32 1.0, %v1853_v9 }
0x1118   :  { %1854 = vrcp.f32 %v1125_v15 }
0x1119   :  { %1856 = vrcp.f32 %v1196_v54 }
0x1125   :  { %v1855_v16 = vpop.eup %1854 }
0x1126   :  { %v1857_v19 = vpop.eup %1856  ;;  %v1129_v22 = vmul.f32 %v1855_v16, %v2194_v48 }
0x1127   :  { %v1200_v27 = vmul.f32 %v1857_v19, %v2198_v44 }
0x117f   :  { %v1132_v17 = vpop.permute.xlu1 %1131 }
0x1180   :  { %v1134_v18 = vmul.f32 %v1855_v16, %v1132_v17  ;;  %v11_v17 = vstv %s2267_s5 }
0x1181   :  { %12 = vst [vmem:[#allocation2] sm:$0x1] %v11_v17 }
0x1182   :  { %1136 = vrot.lane.b32.xlu1 %v1134_v18, %s1883_s8 }
0x1187   :  { %v1203_v20 = vpop.permute.xlu0 %1202 }
0x1188   :  { %v1205_v21 = vmul.f32 %v1857_v19, %v1203_v20 }
0x118a   :  { %1207 = vrot.lane.b32.xlu0 %v1205_v21, %s1883_s8  ;;  %v1369_v21 = vld [vmem:[#allocation2] sm:$0x1] }
0x11f4   :  { %v1137_v24 = vpop.permute.xlu1 %1136 }
0x11f5   :  { %v1139_v25 = vadd.f32 %v1137_v24, %v1129_v22 }
0x11f7   :  { %1858 = vtanh.f32 %v1139_v25 }
0x11fc   :  { %v1208_v28 = vpop.permute.xlu0 %1207 }
0x11fd   :  { %v1210_v29 = vadd.f32 %v1208_v28, %v1200_v27  ;;  %v1375_v27 = vlaneseq }
0x11ff   :  { %1860 = vtanh.f32 %v1210_v29  ;;  %v1376_v28 = vshrl.u32 %v1375_v27, 7 }
0x1204   :  { %v1859_v30 = vpop.eup %1858 }
0x1205   :  { %1142 = vrot.lane.b32.xlu1 %v1859_v30, %s1882_s7 }
0x120c   :  { %v1861_v47 = vpop.eup %1860 }
0x120d   :  { %1213 = vrot.lane.b32.xlu0 %v1861_v47, %s1882_s7 }
0x1277   :  { %v1143_v31 = vpop.permute.xlu1 %1142 }
0x1278   :  { %v1145_v23 = vmul.f32 %v1855_v16, %v1143_v31 }
0x127a   :  { %v1146_v32 = vpack.c.bf16 %v1145_v23, %v1145_v23 }
0x127c   :  { %1219 = vrot.lane.b32.xlu1 %v1146_v32, %s1883_s8 }
0x127f   :  { %v1214_v49 = vpop.permute.xlu0 %1213 }
0x1280   :  { %v1216_v33 = vmul.f32 %v1857_v19, %v1214_v49 }
0x1282   :  { %v1217_v34 = vpack.c.bf16 %v1216_v33, %v1216_v33 }
0x1284   :  { %1290 = vrot.lane.b32.xlu0 %v1217_v34, %s1883_s8 }
0x12ee   :  { %v1220_v35 = vpop.permute.xlu1 %1219 }
0x12ef   :  { %1715 = vmatmul.mubr.msk.bf16.vlgmr.msra.gmra.mxu0 %vm232_vm3, %v1220_v35 }
0x12f0   :  { %1730 = vmatprep.mubr.msk.f32.mxu0 %vm1880_vm2, %v1879_v1 }
0x12f6   :  { %v1291_v26 = vpop.permute.xlu0 %1290 }
0x12f7   :  { %1723 = vmatmul.mubr.msk.bf16.vlgmr.msra.gmra.mxu1 %vm232_vm3, %v1291_v26 }
0x13af   :  { %v1258_v38 = vpop.f32.mrf.mxu0 }
0x13b0   :  { %v1259_v39 = vadd.f32 %v1258_v38, %v210_v37 }
0x13b1   :  { %v1716_v40 = vpop.f32.mrf.mxu0 }
0x13b2   :  { %1862 = vtanh.f32 %v1259_v39  ;;  %v1514_v51 = vmul.f32 -1.442695, %v1259_v39 }
0x13b3   :  { %v1261_v48 = vpop.f32.mrf.mxu0 }
0x13b5   :  { %v1717_v41 = vpop.f32.mrf.mxu0 }
0x13b7   :  { %v1329_v44 = vpop.f32.mrf.mxu1 }
0x13b8   :  { %v1330_v50 = vadd.f32 %v1329_v44, %v213_v42 }
0x13b9   :  { %v1724_v46 = vpop.f32.mrf.mxu1 }
0x13ba   :  { %1864 = vtanh.f32 %v1330_v50  ;;  %v1516_v59 = vmul.f32 -1.442695, %v1330_v50 }
0x13bb   :  { %v1332_v55 = vpop.f32.mrf.mxu1  ;;  %1866 = vpow2.f32 %v1514_v51 }
0x13bc   :  { %1868 = vpow2.f32 %v1516_v59 }
0x13bd   :  { %v1725_v56 = vpop.f32.mrf.mxu1 }
0x13bf   :  { %v1863_v57 = vpop.eup %1862 }
0x13c0   :  { %1273 = vrot.lane.b32.xlu1 %v1863_v57, %s1882_s7 }
0x13c7   :  { %v1865_v58 = vpop.eup %1864 }
0x13c8   :  { %1344 = vrot.lane.b32.xlu0 %v1865_v58, %s1882_s7  ;;  %v1867_v60 = vpop.eup %1866 }
0x13c9   :  { %v1267_v43 = vadd.f32 1.0, %v1867_v60  ;;  %v1869_v53 = vpop.eup %1868 }
0x13ca   :  { %v1338_v61 = vadd.f32 1.0, %v1869_v53 }
0x13cb   :  { %1870 = vrcp.f32 %v1267_v43 }
0x13cc   :  { %1872 = vrcp.f32 %v1338_v61 }
0x13d8   :  { %v1871_v62 = vpop.eup %1870 }
0x13d9   :  { %v1873_v0 = vpop.eup %1872  ;;  %v1271_v5 = vmul.f32 %v1871_v62, %v1139_v25  ;;  %v1368_v25 = vld [vmem:[%s2268_s4] sm:$0x1] }
0x13da   :  { %v1342_v8 = vmul.f32 %v1873_v0, %v1210_v29  ;;  %v1377_v29 = vsub.s32 0, %v1376_v28 }
0x1432   :  { %v1274_v63 = vpop.permute.xlu1 %1273 }
0x1433   :  { %v1276_v45 = vmul.f32 %v1871_v62, %v1274_v63 }
0x1435   :  { %1278 = vrot.lane.b32.xlu1 %v1276_v45, %s1883_s8 }
0x143a   :  { %v1345_v2 = vpop.permute.xlu0 %1344 }
0x143b   :  { %v1347_v4 = vmul.f32 %v1873_v0, %v1345_v2 }
0x143d   :  { %1349 = vrot.lane.b32.xlu0 %v1347_v4, %s1883_s8 }
0x14a7   :  { %v1279_v3 = vpop.permute.xlu1 %1278 }
0x14a8   :  { %v1281_v7 = vadd.f32 %v1279_v3, %v1271_v5 }
0x14aa   :  { %1874 = vtanh.f32 %v1281_v7 }
0x14af   :  { %v1350_v10 = vpop.permute.xlu0 %1349 }
0x14b0   :  { %v1352_v11 = vadd.f32 %v1350_v10, %v1342_v8 }
0x14b2   :  { %1876 = vtanh.f32 %v1352_v11 }
0x14b7   :  { %v1875_v13 = vpop.eup %1874 }
0x14b8   :  { %1284 = vrot.lane.b32.xlu1 %v1875_v13, %s1882_s7 }
0x14bf   :  { %v1877_v6 = vpop.eup %1876 }
0x14c0   :  { %1355 = vrot.lane.b32.xlu0 %v1877_v6, %s1882_s7 }
0x152a   :  { %v1285_v52 = vpop.permute.xlu1 %1284 }
0x152b   :  { %v1287_v14 = vmul.f32 %v1871_v62, %v1285_v52 }
0x152d   :  { %v1288_v54 = vpack.c.bf16 %v1287_v14, %v1287_v14 }
0x1532   :  { %v1356_v12 = vpop.permute.xlu0 %1355 }
0x1533   :  { %v1358_v15 = vmul.f32 %v1873_v0, %v1356_v12 }
0x1535   :  { %v1359_v9 = vpack.c.bf16 %v1358_v15, %v1358_v15 }
0x1537   :  { %v1361_v16 = vrot.slane %v1359_v9, 4 }
0x1539   :  { %v1364_v18 = vsel %vm115_vm0, %v1288_v54, %v1361_v16 }
0x153a   :  { %v1367_v19 = vunpack.c.h.bf16 %v1364_v18  ;;  %v1366_v20 = vunpack.c.l.bf16 %v1364_v18 }
0x153c   :  { %1383 = vrot.lane.b32.xlu0 %v1367_v19, %s1883_s8  ;;  %1381 = vrot.lane.b32.xlu1 %v1366_v20, %s1883_s8 }
0x1540   :  { %1372 = vperm.xlu0 %1739, %v1369_v21  }
0x15ae   :  { %v1384_v22 = vpop.permute.xlu0 %1383  ;;  %v1382_v24 = vpop.permute.xlu1 %1381 }
0x15af   :  { %1727 = vmatpush3.xpose.msk.msra.mxu0 %vm232_vm3, %v1384_v22 }
0x15b0   :  { %1728 = vmatprep.subr.mxu0 %v1879_v1 }
0x15b3   :  { %1729 = vmatpush3.xpose.msk.msra.mxu0 %vm232_vm3, %v1382_v24 }
0x15b6   :  { %1731 = vmatmul.mubr.msk.f32.vlgmr.msra.gmra.mxu0 %vm232_vm3, %v1368_v25 }
0x15bb   :  { %v1373_v30 = vpop.permute.xlu0 %1372 }
0x15bc   :  { %v1378_v47 = vrot.slane %v1373_v30, %v1377_v29 }
0x1676   :  { %v1458_v31 = vpop.f32.mrf.mxu0 }
0x1677   :  { %v1459_v23 = vadd.f32 %v1458_v31, %v1378_v47 }
0x1678   :  { %v1732_v32 = vpop.f32.mrf.mxu0 }
0x1679   :  { %1463 = vst.msk [vmem:[%s2269_s6] sm:$0x1] %vm1462_vm4, %v1459_v23 }

</bundles_post_ra>
